<compile_context>
chip_gen: v6e
topology: v6e:2x2x1
jax: 0.10.0
libtpu: 0.0.40
codegen_flags: <defaults>
</compile_context>

<pallas_src>
from functools import lru_cache

import numpy as np
import jax
import jax.numpy as jnp
from jax.experimental import pallas as pl
from jax.experimental.pallas import tpu as pltpu


def get_frequency_modes(seq_len, modes=64, mode_select_method='random'):
    modes = min(modes, seq_len // 2)
    if mode_select_method == 'random':
        index = list(range(0, seq_len // 2))
        np.random.shuffle(index)
        index = index[:modes]
    else:
        index = list(range(0, modes))
    index.sort()
    return index


def _fourier_cross_attn_kernel(xq_ref, xk_ref, fcq_ref, fsq_ref, fck_ref, fsk_ref,
                               w1_ref, w2_ref, gcos_ref, gsin_ref, out_ref):
    f32 = jnp.float32
    bsub, eo, lp = out_ref.shape
    mq, e, _ = w1_ref.shape
    mkv = fck_ref.shape[1]

    xq = xq_ref[...]                                   # (bsub*E, L) bf16
    xk = xk_ref[...]

    # ---- forward DFT restricted to the selected modes: one matmul per
    # real/imag part (no packed tables -> no mid-vreg lane splits); all
    # bsub*E rows fused into the MXU M dimension.
    qr = jnp.dot(xq, fcq_ref[...], preferred_element_type=f32)   # (bsub*E, Mq)
    qi = jnp.dot(xq, fsq_ref[...], preferred_element_type=f32)   # fsq = -sin
    kr = jnp.dot(xk, fck_ref[...], preferred_element_type=f32)   # (bsub*E, Mkv)
    ki = jnp.dot(xk, fsk_ref[...], preferred_element_type=f32)

    qr = qr.reshape(bsub, e, mq)
    qi = qi.reshape(bsub, e, mq)
    kr = kr.reshape(bsub, e, mkv)
    ki = ki.reshape(bsub, e, mkv)

    # ---- xqk_ft = 'bex,bey->bxy' complex (no conjugation), batched over the
    # batch sub-block (single dot_general per term, leading batch dim).
    def qk(a, b):
        return jnp.einsum('bex,bey->bxy', a, b, preferred_element_type=f32)
    s_re = jnp.tanh(qk(qr, kr) - qk(qi, ki))           # (bsub, Mq, Mkv)
    s_im = jnp.tanh(qk(qr, ki) + qk(qi, kr))

    # ---- xqkv_ft = 'bxy,bey->bxe' complex, batched over the batch sub-block.
    def sk(s, k):
        return jnp.einsum('bxy,bey->bxe', s, k, preferred_element_type=f32)
    a_re = sk(s_re, kr) - sk(s_im, ki)                 # (bsub, Mq, E)
    a_im = sk(s_re, ki) + sk(s_im, kr)

    # Mode-leading layout for the mode-batched weight dot (one small sublane
    # relayout instead of per-batch stacks).
    a_re = jnp.transpose(a_re, (1, 0, 2))              # (Mq, bsub, E)
    a_im = jnp.transpose(a_im, (1, 0, 2))

    # ---- xqkvw = 'bex,eox->box' with complex weights w1 + i*w2, as MXU
    # dot_generals batched over the mode dimension.
    w1 = w1_ref[...]                                   # (Mq, E, Eo)
    w2 = w2_ref[...]
    def wdot(a, w):
        return jnp.einsum('xbe,xeo->xbo', a, w, preferred_element_type=f32)
    o_re = wdot(a_re, w1) - wdot(a_im, w2)             # (Mq, bsub, Eo)
    o_im = wdot(a_re, w2) + wdot(a_im, w1)

    # ---- fused inverse real DFT for all (b, o) rows at once; c_j / L /
    # in_channels / out_channels scalings are folded into gcos/gsin, and Lp is
    # lane-padded so the final store is an unmasked full-vreg vst.
    o_re = o_re.reshape(mq, bsub * eo)
    o_im = o_im.reshape(mq, bsub * eo)

    def idft(o, g):    # contract the mode dim: (Mq, R) x (Mq, Lp) -> (R, Lp)
        return jax.lax.dot_general(o, g, (((0,), (0,)), ((), ())),
                                   preferred_element_type=f32)
    out = idft(o_re, gcos_ref[...]) - idft(o_im, gsin_ref[...])  # (bsub*Eo, Lp)
    out_ref[...] = out.reshape(bsub, eo, lp)


@lru_cache(maxsize=None)
def _dft_tables(L, Lp, index_q, index_kv, in_channels, out_channels):
    """Mode-restricted DFT / inverse-DFT tables (built once per config)."""
    l = np.arange(L, dtype=np.float64)
    jq = np.asarray(index_q, dtype=np.float64)
    jk = np.asarray(index_kv, dtype=np.float64)

    th_q = 2.0 * np.pi * np.outer(l, jq) / L           # (L, Mq)
    th_k = 2.0 * np.pi * np.outer(l, jk) / L           # (L, Mkv)
    fcq, fsq = np.cos(th_q), -np.sin(th_q)             # rfft: X = x @ (cos - i sin)
    fck, fsk = np.cos(th_k), -np.sin(th_k)

    # Inverse real DFT for the selected modes with c_j (1 for DC/Nyquist, else 2)
    # and 1/(L * in_channels * out_channels) folded in; zero-padded to Lp lanes.
    c = np.where((jq == 0) | (2.0 * jq == L), 1.0, 2.0)
    scale = 1.0 / (L * in_channels * out_channels)
    th_inv = 2.0 * np.pi * np.outer(jq, l) / L         # (Mq, L)
    gcos = np.zeros((jq.shape[0], Lp), np.float32)
    gsin = np.zeros((jq.shape[0], Lp), np.float32)
    gcos[:, :L] = c[:, None] * np.cos(th_inv) * scale
    gsin[:, :L] = c[:, None] * np.sin(th_inv) * scale

    as_bf16 = lambda a: jnp.asarray(a.astype(np.float32), dtype=jnp.bfloat16)
    return (as_bf16(fcq), as_bf16(fsq), as_bf16(fck), as_bf16(fsk),
            jnp.asarray(gcos), jnp.asarray(gsin))


def _pick_block_b(B, H, E):
    divisors = [d for d in range(1, B + 1)
                if B % d == 0 and (d == B or (d * E) % 8 == 0)]
    # Smallest block that fills the MXU M dim (>= 256 rows), capped for VMEM.
    good = [d for d in divisors if 256 <= d * E <= 2048]
    if good:
        block_b = min(good)
    else:
        under = [d for d in divisors if d * E <= 2048]
        block_b = max(under) if under else min(divisors)
    # Keep the total parallel grid extent even for v7x's two TensorCores.
    if (H * (B // block_b)) % 2 == 1:
        smaller = [d for d in divisors if d < block_b and (H * (B // d)) % 2 == 0]
        if smaller:
            block_b = max(smaller)
    return block_b


def fourier_cross_attention(q, k, v, w1, w2, index_q, index_kv,
                            in_channels, out_channels, activation='tanh',
                            block_b=None):
    """Forward pass of FourierCrossAttention (tanh activation)."""
    assert activation == 'tanh'
    # TODO(synk): the 'softmax' activation branch of the module is not implemented.
    del v  # v is unused in the reference PyTorch forward
    B, L, H, E = q.shape
    Mq, Mkv = len(index_q), len(index_kv)
    Eo = w1.shape[2]
    Lp = ((L + 127) // 128) * 128          # lane-dense output stores

    if block_b is None:
        block_b = _pick_block_b(B, H, E)
    assert B % block_b == 0
    block_rows = block_b * E

    # (B, L, H, E) -> (H, B*E, L), bf16: head-major so per-head weights stay
    # resident across the inner (batch) grid axis; bf16 halves HBM->VMEM bytes.
    # TODO(synk): the minor-dim transpose is a separate XLA pass over q/k; fold it
    # into the BlockSpec if profiling shows it dominates at production sizes.
    xq = jnp.transpose(q, (2, 0, 3, 1)).reshape(H, B * E, L).astype(jnp.bfloat16)
    xk = jnp.transpose(k, (2, 0, 3, 1)).reshape(H, B * E, L).astype(jnp.bfloat16)

    # (H, E, Eo, Mq) -> (H, Mq, E, Eo): mode dim leading for the mode-batched dot.
    w1t = jnp.transpose(w1, (0, 3, 1, 2)).astype(jnp.float32)
    w2t = jnp.transpose(w2, (0, 3, 1, 2)).astype(jnp.float32)

    fcq, fsq, fck, fsk, gcos, gsin = _dft_tables(
        L, Lp, tuple(index_q), tuple(index_kv), in_channels, out_channels)

    grid = (H, B // block_b)   # h outer (weights resident), batch blocks inner

    # Rough per-step VMEM footprint; only raise the scoped-VMEM limit when the
    # conservative default would be too small (toy config stays on defaults).
    est = (2 * 2 * block_rows * L * 2            # xq, xk blocks (bf16, 2 buffers)
           + 2 * block_b * Eo * Lp * 4           # output block (2 buffers)
           + 2 * 2 * Mq * E * Eo * 4             # w1, w2 (2 buffers)
           + 2 * (Mq + Mkv) * L * 2              # forward DFT tables
           + 2 * Mq * Lp * 4                     # inverse DFT tables
           + 8 * block_rows * max(Mq, Mkv) * 4   # in-kernel spectra
           + 4 * block_b * Mq * Mkv * 4          # attention scores
           + 2 * block_b * Eo * Lp * 4)          # in-kernel time-domain result
    cparams = dict(dimension_semantics=("parallel", "parallel"))
    if est > (16 << 20):
        cparams["vmem_limit_bytes"] = min(2 * est, 112 << 20)

    def _run(single_buffer_consts):
        # Grid-invariant tables never change block index (fetched once);
        # single-buffering them just trims VMEM (relevant on v7x's 64 MiB).
        ck = dict(pipeline_mode=pl.Buffered(1)) if single_buffer_consts else {}
        in_specs = [
            pl.BlockSpec((None, block_rows, L), lambda h, b: (h, b, 0)),
            pl.BlockSpec((None, block_rows, L), lambda h, b: (h, b, 0)),
            pl.BlockSpec((L, Mq), lambda h, b: (0, 0), **ck),
            pl.BlockSpec((L, Mq), lambda h, b: (0, 0), **ck),
            pl.BlockSpec((L, Mkv), lambda h, b: (0, 0), **ck),
            pl.BlockSpec((L, Mkv), lambda h, b: (0, 0), **ck),
            # weight block index depends only on h -> no re-DMA across b steps
            pl.BlockSpec((None, Mq, E, Eo), lambda h, b: (h, 0, 0, 0)),
            pl.BlockSpec((None, Mq, E, Eo), lambda h, b: (h, 0, 0, 0)),
            pl.BlockSpec((Mq, Lp), lambda h, b: (0, 0), **ck),
            pl.BlockSpec((Mq, Lp), lambda h, b: (0, 0), **ck),
        ]
        # Output written directly in (B, H, Eo, Lp) layout -> no post-kernel
        # transpose; Lp is a multiple of 128 -> unmasked full-vreg stores.
        out_spec = pl.BlockSpec((block_b, None, Eo, Lp), lambda h, b: (b, h, 0, 0))
        return pl.pallas_call(
            _fourier_cross_attn_kernel,
            out_shape=jax.ShapeDtypeStruct((B, H, Eo, Lp), jnp.float32),
            grid=grid,
            in_specs=in_specs,
            out_specs=out_spec,
            compiler_params=pltpu.CompilerParams(**cparams),
        )(xq, xk, fcq, fsq, fck, fsk, w1t, w2t, gcos, gsin)

    try:
        out = _run(True)
    except Exception:          # pl.Buffered(1) not supported on this jax version
        out = _run(False)

    if Lp != L:
        out = out[..., :L]
    return out, None


def reference(q, k, index_q, index_kv, w1, w2, in_channels, out_channels):
    """Pure-JAX reference mirroring the PyTorch forward (tanh activation)."""
    B, L, H, E = q.shape
    xq = jnp.transpose(q, (0, 2, 3, 1))
    xk = jnp.transpose(k, (0, 2, 3, 1))
    xq_ft = jnp.fft.rfft(xq, axis=-1)
    xk_ft = jnp.fft.rfft(xk, axis=-1)
    xq_ft_ = xq_ft[..., jnp.asarray(index_q)]
    xk_ft_ = xk_ft[..., jnp.asarray(index_kv)]
    xqk = jnp.einsum('bhex,bhey->bhxy', xq_ft_, xk_ft_)
    xqk = jnp.tanh(xqk.real) + 1j * jnp.tanh(xqk.imag)
    xqkv = jnp.einsum('bhxy,bhey->bhex', xqk, xk_ft_)
    w = w1 + 1j * w2
    xqkvw = jnp.einsum('bhex,heox->bhox', xqkv, w)
    out_ft = jnp.zeros((B, H, w1.shape[2], L // 2 + 1), dtype=jnp.complex64)
    out_ft = out_ft.at[..., jnp.asarray(index_q)].set(xqkvw)
    out = jnp.fft.irfft(out_ft / in_channels / out_channels, n=L, axis=-1)
    return out


if __name__ == "__main__":
    # Small config consistent with the module: d_model=16, n_heads=2, seq_len=16.
    B, L, H, d_model = 2, 16, 2, 16
    E = d_model // H
    in_channels = out_channels = d_model

    np.random.seed(0)
    index_q = get_frequency_modes(L, modes=64, mode_select_method='random')
    index_kv = get_frequency_modes(L, modes=64, mode_select_method='random')
    Mq = len(index_q)

    key = jax.random.PRNGKey(0)
    kq, kk, kv, kw1, kw2 = jax.random.split(key, 5)
    q = jax.random.normal(kq, (B, L, H, E), dtype=jnp.float32)
    k = jax.random.normal(kk, (B, L, H, E), dtype=jnp.float32)
    v = jax.random.normal(kv, (B, L, H, E), dtype=jnp.float32)

    # Deterministic parameter init (matches torch.rand * scale shapes).
    w_scale = 1.0 / (in_channels * out_channels)
    w1 = w_scale * jax.random.uniform(kw1, (H, E, E, Mq), dtype=jnp.float32)
    w2 = w_scale * jax.random.uniform(kw2, (H, E, E, Mq), dtype=jnp.float32)

    out, attn = fourier_cross_attention(q, k, v, w1, w2, index_q, index_kv,
                                        in_channels, out_channels)
    out = jax.block_until_ready(out)

    ref = jax.block_until_ready(
        reference(q, k, index_q, index_kv, w1, w2, in_channels, out_channels))

    out_np = np.asarray(out, dtype=np.float64)
    ref_np = np.asarray(ref, dtype=np.float64)
    assert out_np.shape == ref_np.shape
    # Normalized (by the output's own magnitude) max error so the check stays
    # meaningful despite the tiny 1/(L*in_channels*out_channels) scaling; bound
    # sized for single-pass bf16 MXU matmuls with f32 accumulation.
    rel_err = np.max(np.abs(out_np - ref_np)) / (np.max(np.abs(ref_np)) + 1e-30)
    assert rel_err < 5e-2, f"relative error too large: {rel_err}"
    assert attn is None
    print("KERNEL_OK")
</pallas_src>

<mosaic_0001>
module attributes {stable_mosaic.version = 11 : i64} {
  func.func @_fourier_cross_attn_kernel(%arg0: i32, %arg1: i32, %arg2: memref<1x16x16xbf16, #tpu.memory_space<vmem>>, %arg3: memref<1x16x16xbf16, #tpu.memory_space<vmem>>, %arg4: memref<16x8xbf16, #tpu.memory_space<vmem>>, %arg5: memref<16x8xbf16, #tpu.memory_space<vmem>>, %arg6: memref<16x8xbf16, #tpu.memory_space<vmem>>, %arg7: memref<16x8xbf16, #tpu.memory_space<vmem>>, %arg8: memref<1x8x8x8xf32, #tpu.memory_space<vmem>>, %arg9: memref<1x8x8x8xf32, #tpu.memory_space<vmem>>, %arg10: memref<8x128xf32, #tpu.memory_space<vmem>>, %arg11: memref<8x128xf32, #tpu.memory_space<vmem>>, %arg12: memref<2x1x8x128xf32, #tpu.memory_space<vmem>>) attributes {dimension_semantics = [#tpu.dimension_semantics<parallel>, #tpu.dimension_semantics<parallel>], iteration_bounds = array<i64: 2, 1>, scalar_prefetch = 0 : i64, scratch_operands = 0 : i64, tpu.core_type = #tpu.core_type<tc>, window_params = [{transform_indices = @transform_0, window_bounds = array<i64: 1, 16, 16>}, {transform_indices = @transform_1, window_bounds = array<i64: 1, 16, 16>}, {pipeline_mode = #tpu.pipeline_mode<synchronous>, transform_indices = @transform_2, window_bounds = array<i64: 16, 8>}, {pipeline_mode = #tpu.pipeline_mode<synchronous>, transform_indices = @transform_3, window_bounds = array<i64: 16, 8>}, {pipeline_mode = #tpu.pipeline_mode<synchronous>, transform_indices = @transform_4, window_bounds = array<i64: 16, 8>}, {pipeline_mode = #tpu.pipeline_mode<synchronous>, transform_indices = @transform_5, window_bounds = array<i64: 16, 8>}, {transform_indices = @transform_6, window_bounds = array<i64: 1, 8, 8, 8>}, {transform_indices = @transform_7, window_bounds = array<i64: 1, 8, 8, 8>}, {pipeline_mode = #tpu.pipeline_mode<synchronous>, transform_indices = @transform_8, window_bounds = array<i64: 8, 128>}, {pipeline_mode = #tpu.pipeline_mode<synchronous>, transform_indices = @transform_9, window_bounds = array<i64: 8, 128>}, {transform_indices = @transform_10, window_bounds = array<i64: 2, 1, 8, 128>}]} {
    %c0 = arith.constant 0 : index
    %c0_0 = arith.constant 0 : index
    %c0_1 = arith.constant 0 : index
    %0 = vector.load %arg2[%c0, %c0_0, %c0_1] : memref<1x16x16xbf16, #tpu.memory_space<vmem>>, vector<1x16x16xbf16>
    %1 = vector.shape_cast %0 : vector<1x16x16xbf16> to vector<16x16xbf16>
    %c0_2 = arith.constant 0 : index
    %c0_3 = arith.constant 0 : index
    %c0_4 = arith.constant 0 : index
    %2 = vector.load %arg3[%c0_2, %c0_3, %c0_4] : memref<1x16x16xbf16, #tpu.memory_space<vmem>>, vector<1x16x16xbf16>
    %3 = vector.shape_cast %2 : vector<1x16x16xbf16> to vector<16x16xbf16>
    %c0_5 = arith.constant 0 : index
    %c0_6 = arith.constant 0 : index
    %4 = vector.load %arg4[%c0_5, %c0_6] : memref<16x8xbf16, #tpu.memory_space<vmem>>, vector<16x8xbf16>
    %cst = arith.constant dense<0.000000e+00> : vector<16x8xf32>
    %5 = tpu.matmul %1, %4, %cst {dimension_numbers = #tpu.dot_dimension_numbers<[1], [0], [0], [1], [0, 0, 1, 1], [], []>} : vector<16x16xbf16>, vector<16x8xbf16>, vector<16x8xf32> -> vector<16x8xf32>
    %c0_7 = arith.constant 0 : index
    %c0_8 = arith.constant 0 : index
    %6 = vector.load %arg5[%c0_7, %c0_8] : memref<16x8xbf16, #tpu.memory_space<vmem>>, vector<16x8xbf16>
    %cst_9 = arith.constant dense<0.000000e+00> : vector<16x8xf32>
    %7 = tpu.matmul %1, %6, %cst_9 {dimension_numbers = #tpu.dot_dimension_numbers<[1], [0], [0], [1], [0, 0, 1, 1], [], []>} : vector<16x16xbf16>, vector<16x8xbf16>, vector<16x8xf32> -> vector<16x8xf32>
    %c0_10 = arith.constant 0 : index
    %c0_11 = arith.constant 0 : index
    %8 = vector.load %arg6[%c0_10, %c0_11] : memref<16x8xbf16, #tpu.memory_space<vmem>>, vector<16x8xbf16>
    %cst_12 = arith.constant dense<0.000000e+00> : vector<16x8xf32>
    %9 = tpu.matmul %3, %8, %cst_12 {dimension_numbers = #tpu.dot_dimension_numbers<[1], [0], [0], [1], [0, 0, 1, 1], [], []>} : vector<16x16xbf16>, vector<16x8xbf16>, vector<16x8xf32> -> vector<16x8xf32>
    %c0_13 = arith.constant 0 : index
    %c0_14 = arith.constant 0 : index
    %10 = vector.load %arg7[%c0_13, %c0_14] : memref<16x8xbf16, #tpu.memory_space<vmem>>, vector<16x8xbf16>
    %cst_15 = arith.constant dense<0.000000e+00> : vector<16x8xf32>
    %11 = tpu.matmul %3, %10, %cst_15 {dimension_numbers = #tpu.dot_dimension_numbers<[1], [0], [0], [1], [0, 0, 1, 1], [], []>} : vector<16x16xbf16>, vector<16x8xbf16>, vector<16x8xf32> -> vector<16x8xf32>
    %12 = vector.shape_cast %5 : vector<16x8xf32> to vector<2x8x8xf32>
    %13 = vector.shape_cast %7 : vector<16x8xf32> to vector<2x8x8xf32>
    %14 = vector.shape_cast %9 : vector<16x8xf32> to vector<2x8x8xf32>
    %15 = vector.shape_cast %11 : vector<16x8xf32> to vector<2x8x8xf32>
    "tpu.trace_start"() <{level = 10 : i32, message = "bex,bey->bxy"}> : () -> ()
    %cst_16 = arith.constant dense<0.000000e+00> : vector<2x8x8xf32>
    %16 = tpu.matmul %12, %14, %cst_16 {dimension_numbers = #tpu.dot_dimension_numbers<[1], [1], [2], [2], [0, 0, 0, 2, 1, 2], [0], [0]>} : vector<2x8x8xf32>, vector<2x8x8xf32>, vector<2x8x8xf32> -> vector<2x8x8xf32>
    %cst_17 = arith.constant dense<0.000000e+00> : vector<2x8x8xf32>
    %17 = tpu.matmul %13, %15, %cst_17 {dimension_numbers = #tpu.dot_dimension_numbers<[1], [1], [2], [2], [0, 0, 0, 2, 1, 2], [0], [0]>} : vector<2x8x8xf32>, vector<2x8x8xf32>, vector<2x8x8xf32> -> vector<2x8x8xf32>
    "tpu.trace_stop"() : () -> ()
    %18 = arith.subf %16, %17 : vector<2x8x8xf32>
    %19 = math.tanh %18 : vector<2x8x8xf32>
    "tpu.trace_start"() <{level = 10 : i32, message = "bex,bey->bxy"}> : () -> ()
    %cst_18 = arith.constant dense<0.000000e+00> : vector<2x8x8xf32>
    %20 = tpu.matmul %12, %15, %cst_18 {dimension_numbers = #tpu.dot_dimension_numbers<[1], [1], [2], [2], [0, 0, 0, 2, 1, 2], [0], [0]>} : vector<2x8x8xf32>, vector<2x8x8xf32>, vector<2x8x8xf32> -> vector<2x8x8xf32>
    %cst_19 = arith.constant dense<0.000000e+00> : vector<2x8x8xf32>
    %21 = tpu.matmul %13, %14, %cst_19 {dimension_numbers = #tpu.dot_dimension_numbers<[1], [1], [2], [2], [0, 0, 0, 2, 1, 2], [0], [0]>} : vector<2x8x8xf32>, vector<2x8x8xf32>, vector<2x8x8xf32> -> vector<2x8x8xf32>
    "tpu.trace_stop"() : () -> ()
    %22 = arith.addf %20, %21 : vector<2x8x8xf32>
    %23 = math.tanh %22 : vector<2x8x8xf32>
    "tpu.trace_start"() <{level = 10 : i32, message = "bxy,bey->bxe"}> : () -> ()
    %cst_20 = arith.constant dense<0.000000e+00> : vector<2x8x8xf32>
    %24 = tpu.matmul %19, %14, %cst_20 {dimension_numbers = #tpu.dot_dimension_numbers<[2], [2], [1], [1], [0, 0, 0, 1, 1, 1], [0], [0]>} : vector<2x8x8xf32>, vector<2x8x8xf32>, vector<2x8x8xf32> -> vector<2x8x8xf32>
    %cst_21 = arith.constant dense<0.000000e+00> : vector<2x8x8xf32>
    %25 = tpu.matmul %23, %15, %cst_21 {dimension_numbers = #tpu.dot_dimension_numbers<[2], [2], [1], [1], [0, 0, 0, 1, 1, 1], [0], [0]>} : vector<2x8x8xf32>, vector<2x8x8xf32>, vector<2x8x8xf32> -> vector<2x8x8xf32>
    "tpu.trace_stop"() : () -> ()
    %26 = arith.subf %24, %25 : vector<2x8x8xf32>
    "tpu.trace_start"() <{level = 10 : i32, message = "bxy,bey->bxe"}> : () -> ()
    %cst_22 = arith.constant dense<0.000000e+00> : vector<2x8x8xf32>
    %27 = tpu.matmul %19, %15, %cst_22 {dimension_numbers = #tpu.dot_dimension_numbers<[2], [2], [1], [1], [0, 0, 0, 1, 1, 1], [0], [0]>} : vector<2x8x8xf32>, vector<2x8x8xf32>, vector<2x8x8xf32> -> vector<2x8x8xf32>
    %cst_23 = arith.constant dense<0.000000e+00> : vector<2x8x8xf32>
    %28 = tpu.matmul %23, %14, %cst_23 {dimension_numbers = #tpu.dot_dimension_numbers<[2], [2], [1], [1], [0, 0, 0, 1, 1, 1], [0], [0]>} : vector<2x8x8xf32>, vector<2x8x8xf32>, vector<2x8x8xf32> -> vector<2x8x8xf32>
    "tpu.trace_stop"() : () -> ()
    %29 = arith.addf %27, %28 : vector<2x8x8xf32>
    %30 = tpu.transpose %26, [1, 0, 2] : vector<2x8x8xf32> -> vector<8x2x8xf32>
    %31 = tpu.transpose %29, [1, 0, 2] : vector<2x8x8xf32> -> vector<8x2x8xf32>
    %c0_24 = arith.constant 0 : index
    %c0_25 = arith.constant 0 : index
    %c0_26 = arith.constant 0 : index
    %c0_27 = arith.constant 0 : index
    %32 = vector.load %arg8[%c0_24, %c0_25, %c0_26, %c0_27] : memref<1x8x8x8xf32, #tpu.memory_space<vmem>>, vector<1x8x8x8xf32>
    %33 = vector.shape_cast %32 : vector<1x8x8x8xf32> to vector<8x8x8xf32>
    %c0_28 = arith.constant 0 : index
    %c0_29 = arith.constant 0 : index
    %c0_30 = arith.constant 0 : index
    %c0_31 = arith.constant 0 : index
    %34 = vector.load %arg9[%c0_28, %c0_29, %c0_30, %c0_31] : memref<1x8x8x8xf32, #tpu.memory_space<vmem>>, vector<1x8x8x8xf32>
    %35 = vector.shape_cast %34 : vector<1x8x8x8xf32> to vector<8x8x8xf32>
    "tpu.trace_start"() <{level = 10 : i32, message = "xbe,xeo->xbo"}> : () -> ()
    %cst_32 = arith.constant dense<0.000000e+00> : vector<8x2x8xf32>
    %36 = tpu.matmul %30, %33, %cst_32 {dimension_numbers = #tpu.dot_dimension_numbers<[2], [1], [1], [2], [0, 0, 0, 1, 1, 2], [0], [0]>} : vector<8x2x8xf32>, vector<8x8x8xf32>, vector<8x2x8xf32> -> vector<8x2x8xf32>
    %cst_33 = arith.constant dense<0.000000e+00> : vector<8x2x8xf32>
    %37 = tpu.matmul %31, %35, %cst_33 {dimension_numbers = #tpu.dot_dimension_numbers<[2], [1], [1], [2], [0, 0, 0, 1, 1, 2], [0], [0]>} : vector<8x2x8xf32>, vector<8x8x8xf32>, vector<8x2x8xf32> -> vector<8x2x8xf32>
    "tpu.trace_stop"() : () -> ()
    %38 = arith.subf %36, %37 : vector<8x2x8xf32>
    "tpu.trace_start"() <{level = 10 : i32, message = "xbe,xeo->xbo"}> : () -> ()
    %cst_34 = arith.constant dense<0.000000e+00> : vector<8x2x8xf32>
    %39 = tpu.matmul %30, %35, %cst_34 {dimension_numbers = #tpu.dot_dimension_numbers<[2], [1], [1], [2], [0, 0, 0, 1, 1, 2], [0], [0]>} : vector<8x2x8xf32>, vector<8x8x8xf32>, vector<8x2x8xf32> -> vector<8x2x8xf32>
    %cst_35 = arith.constant dense<0.000000e+00> : vector<8x2x8xf32>
    %40 = tpu.matmul %31, %33, %cst_35 {dimension_numbers = #tpu.dot_dimension_numbers<[2], [1], [1], [2], [0, 0, 0, 1, 1, 2], [0], [0]>} : vector<8x2x8xf32>, vector<8x8x8xf32>, vector<8x2x8xf32> -> vector<8x2x8xf32>
    "tpu.trace_stop"() : () -> ()
    %41 = arith.addf %39, %40 : vector<8x2x8xf32>
    %42 = vector.shape_cast %38 : vector<8x2x8xf32> to vector<8x16xf32>
    %43 = vector.shape_cast %41 : vector<8x2x8xf32> to vector<8x16xf32>
    %c0_36 = arith.constant 0 : index
    %c0_37 = arith.constant 0 : index
    %44 = vector.load %arg10[%c0_36, %c0_37] : memref<8x128xf32, #tpu.memory_space<vmem>>, vector<8x128xf32>
    %cst_38 = arith.constant dense<0.000000e+00> : vector<16x128xf32>
    %45 = tpu.matmul %42, %44, %cst_38 {dimension_numbers = #tpu.dot_dimension_numbers<[0], [0], [1], [1], [0, 1, 1, 1], [], []>} : vector<8x16xf32>, vector<8x128xf32>, vector<16x128xf32> -> vector<16x128xf32>
    %c0_39 = arith.constant 0 : index
    %c0_40 = arith.constant 0 : index
    %46 = vector.load %arg11[%c0_39, %c0_40] : memref<8x128xf32, #tpu.memory_space<vmem>>, vector<8x128xf32>
    %cst_41 = arith.constant dense<0.000000e+00> : vector<16x128xf32>
    %47 = tpu.matmul %43, %46, %cst_41 {dimension_numbers = #tpu.dot_dimension_numbers<[0], [0], [1], [1], [0, 1, 1, 1], [], []>} : vector<8x16xf32>, vector<8x128xf32>, vector<16x128xf32> -> vector<16x128xf32>
    %48 = arith.subf %45, %47 : vector<16x128xf32>
    %49 = vector.shape_cast %48 : vector<16x128xf32> to vector<2x8x128xf32>
    %c0_42 = arith.constant 0 : index
    %c0_43 = arith.constant 0 : index
    %c0_44 = arith.constant 0 : index
    %c0_45 = arith.constant 0 : index
    %50 = vector.load %arg12[%c0_42, %c0_43, %c0_44, %c0_45] : memref<2x1x8x128xf32, #tpu.memory_space<vmem>>, vector<2x1x8x128xf32>
    %51 = vector.shape_cast %50 : vector<2x1x8x128xf32> to vector<2x8x128xf32>
    %52 = vector.shape_cast %49 : vector<2x8x128xf32> to vector<2x1x8x128xf32>
    tpu.vector_store %arg12[%c0_42, %c0_43, %c0_44, %c0_45], %52 {strides = array<i32>} : memref<2x1x8x128xf32, #tpu.memory_space<vmem>>, vector<2x1x8x128xf32>,
    return
  }
  func.func @transform_0(%arg0: i32, %arg1: i32) -> (i32, i32, i32) {
    %c0_i32 = arith.constant 0 : i32
    %c0_i32_0 = arith.constant 0 : i32
    return %arg0, %arg1, %c0_i32 : i32, i32, i32
  }
  func.func @transform_1(%arg0: i32, %arg1: i32) -> (i32, i32, i32) {
    %c0_i32 = arith.constant 0 : i32
    %c0_i32_0 = arith.constant 0 : i32
    return %arg0, %arg1, %c0_i32 : i32, i32, i32
  }
  func.func @transform_2(%arg0: i32, %arg1: i32) -> (i32, i32) {
    %c0_i32 = arith.constant 0 : i32
    %c0_i32_0 = arith.constant 0 : i32
    %c0_i32_1 = arith.constant 0 : i32
    return %c0_i32, %c0_i32_0 : i32, i32
  }
  func.func @transform_3(%arg0: i32, %arg1: i32) -> (i32, i32) {
    %c0_i32 = arith.constant 0 : i32
    %c0_i32_0 = arith.constant 0 : i32
    %c0_i32_1 = arith.constant 0 : i32
    return %c0_i32, %c0_i32_0 : i32, i32
  }
  func.func @transform_4(%arg0: i32, %arg1: i32) -> (i32, i32) {
    %c0_i32 = arith.constant 0 : i32
    %c0_i32_0 = arith.constant 0 : i32
    %c0_i32_1 = arith.constant 0 : i32
    return %c0_i32, %c0_i32_0 : i32, i32
  }
  func.func @transform_5(%arg0: i32, %arg1: i32) -> (i32, i32) {
    %c0_i32 = arith.constant 0 : i32
    %c0_i32_0 = arith.constant 0 : i32
    %c0_i32_1 = arith.constant 0 : i32
    return %c0_i32, %c0_i32_0 : i32, i32
  }
  func.func @transform_6(%arg0: i32, %arg1: i32) -> (i32, i32, i32, i32) {
    %c0_i32 = arith.constant 0 : i32
    %c0_i32_0 = arith.constant 0 : i32
    %c0_i32_1 = arith.constant 0 : i32
    %c0_i32_2 = arith.constant 0 : i32
    return %arg0, %c0_i32, %c0_i32_0, %c0_i32_1 : i32, i32, i32, i32
  }
  func.func @transform_7(%arg0: i32, %arg1: i32) -> (i32, i32, i32, i32) {
    %c0_i32 = arith.constant 0 : i32
    %c0_i32_0 = arith.constant 0 : i32
    %c0_i32_1 = arith.constant 0 : i32
    %c0_i32_2 = arith.constant 0 : i32
    return %arg0, %c0_i32, %c0_i32_0, %c0_i32_1 : i32, i32, i32, i32
  }
  func.func @transform_8(%arg0: i32, %arg1: i32) -> (i32, i32) {
    %c0_i32 = arith.constant 0 : i32
    %c0_i32_0 = arith.constant 0 : i32
    %c0_i32_1 = arith.constant 0 : i32
    return %c0_i32, %c0_i32_0 : i32, i32
  }
  func.func @transform_9(%arg0: i32, %arg1: i32) -> (i32, i32) {
    %c0_i32 = arith.constant 0 : i32
    %c0_i32_0 = arith.constant 0 : i32
    %c0_i32_1 = arith.constant 0 : i32
    return %c0_i32, %c0_i32_0 : i32, i32
  }
  func.func @transform_10(%arg0: i32, %arg1: i32) -> (i32, i32, i32, i32) {
    %c0_i32 = arith.constant 0 : i32
    %c0_i32_0 = arith.constant 0 : i32
    %c0_i32_1 = arith.constant 0 : i32
    return %arg1, %arg0, %c0_i32, %c0_i32_0 : i32, i32, i32, i32
  }
}

module attributes {stable_mosaic.version = 11 : i64} {
  func.func @_fourier_cross_attn_kernel(%arg0: i32, %arg1: i32, %arg2: memref<1x16x16xbf16, #tpu.memory_space<vmem>>, %arg3: memref<1x16x16xbf16, #tpu.memory_space<vmem>>, %arg4: memref<16x8xbf16, #tpu.memory_space<vmem>>, %arg5: memref<16x8xbf16, #tpu.memory_space<vmem>>, %arg6: memref<16x8xbf16, #tpu.memory_space<vmem>>, %arg7: memref<16x8xbf16, #tpu.memory_space<vmem>>, %arg8: memref<1x8x8x8xf32, #tpu.memory_space<vmem>>, %arg9: memref<1x8x8x8xf32, #tpu.memory_space<vmem>>, %arg10: memref<8x128xf32, #tpu.memory_space<vmem>>, %arg11: memref<8x128xf32, #tpu.memory_space<vmem>>, %arg12: memref<2x1x8x128xf32, #tpu.memory_space<vmem>>) attributes {dimension_semantics = [#tpu.dimension_semantics<parallel>, #tpu.dimension_semantics<parallel>], iteration_bounds = array<i64: 2, 1>, scalar_prefetch = 0 : i64, scratch_operands = 0 : i64, tpu.core_type = #tpu.core_type<tc>, window_params = [{transform_indices = @transform_0, window_bounds = array<i64: 1, 16, 16>}, {transform_indices = @transform_1, window_bounds = array<i64: 1, 16, 16>}, {pipeline_mode = #tpu.pipeline_mode<synchronous>, transform_indices = @transform_2, window_bounds = array<i64: 16, 8>}, {pipeline_mode = #tpu.pipeline_mode<synchronous>, transform_indices = @transform_3, window_bounds = array<i64: 16, 8>}, {pipeline_mode = #tpu.pipeline_mode<synchronous>, transform_indices = @transform_4, window_bounds = array<i64: 16, 8>}, {pipeline_mode = #tpu.pipeline_mode<synchronous>, transform_indices = @transform_5, window_bounds = array<i64: 16, 8>}, {transform_indices = @transform_6, window_bounds = array<i64: 1, 8, 8, 8>}, {transform_indices = @transform_7, window_bounds = array<i64: 1, 8, 8, 8>}, {pipeline_mode = #tpu.pipeline_mode<synchronous>, transform_indices = @transform_8, window_bounds = array<i64: 8, 128>}, {pipeline_mode = #tpu.pipeline_mode<synchronous>, transform_indices = @transform_9, window_bounds = array<i64: 8, 128>}, {transform_indices = @transform_10, window_bounds = array<i64: 2, 1, 8, 128>}]} {
    %c0 = arith.constant 0 : index
    %c0_0 = arith.constant 0 : index
    %c0_1 = arith.constant 0 : index
    %0 = vector.load %arg2[%c0, %c0_0, %c0_1] : memref<1x16x16xbf16, #tpu.memory_space<vmem>>, vector<1x16x16xbf16>
    %1 = vector.shape_cast %0 : vector<1x16x16xbf16> to vector<16x16xbf16>
    %c0_2 = arith.constant 0 : index
    %c0_3 = arith.constant 0 : index
    %c0_4 = arith.constant 0 : index
    %2 = vector.load %arg3[%c0_2, %c0_3, %c0_4] : memref<1x16x16xbf16, #tpu.memory_space<vmem>>, vector<1x16x16xbf16>
    %3 = vector.shape_cast %2 : vector<1x16x16xbf16> to vector<16x16xbf16>
    %c0_5 = arith.constant 0 : index
    %c0_6 = arith.constant 0 : index
    %4 = vector.load %arg4[%c0_5, %c0_6] : memref<16x8xbf16, #tpu.memory_space<vmem>>, vector<16x8xbf16>
    %cst = arith.constant dense<0.000000e+00> : vector<16x8xf32>
    %5 = tpu.matmul %1, %4, %cst {dimension_numbers = #tpu.dot_dimension_numbers<[1], [0], [0], [1], [0, 0, 1, 1], [], []>} : vector<16x16xbf16>, vector<16x8xbf16>, vector<16x8xf32> -> vector<16x8xf32>
    %c0_7 = arith.constant 0 : index
    %c0_8 = arith.constant 0 : index
    %6 = vector.load %arg5[%c0_7, %c0_8] : memref<16x8xbf16, #tpu.memory_space<vmem>>, vector<16x8xbf16>
    %cst_9 = arith.constant dense<0.000000e+00> : vector<16x8xf32>
    %7 = tpu.matmul %1, %6, %cst_9 {dimension_numbers = #tpu.dot_dimension_numbers<[1], [0], [0], [1], [0, 0, 1, 1], [], []>} : vector<16x16xbf16>, vector<16x8xbf16>, vector<16x8xf32> -> vector<16x8xf32>
    %c0_10 = arith.constant 0 : index
    %c0_11 = arith.constant 0 : index
    %8 = vector.load %arg6[%c0_10, %c0_11] : memref<16x8xbf16, #tpu.memory_space<vmem>>, vector<16x8xbf16>
    %cst_12 = arith.constant dense<0.000000e+00> : vector<16x8xf32>
    %9 = tpu.matmul %3, %8, %cst_12 {dimension_numbers = #tpu.dot_dimension_numbers<[1], [0], [0], [1], [0, 0, 1, 1], [], []>} : vector<16x16xbf16>, vector<16x8xbf16>, vector<16x8xf32> -> vector<16x8xf32>
    %c0_13 = arith.constant 0 : index
    %c0_14 = arith.constant 0 : index
    %10 = vector.load %arg7[%c0_13, %c0_14] : memref<16x8xbf16, #tpu.memory_space<vmem>>, vector<16x8xbf16>
    %cst_15 = arith.constant dense<0.000000e+00> : vector<16x8xf32>
    %11 = tpu.matmul %3, %10, %cst_15 {dimension_numbers = #tpu.dot_dimension_numbers<[1], [0], [0], [1], [0, 0, 1, 1], [], []>} : vector<16x16xbf16>, vector<16x8xbf16>, vector<16x8xf32> -> vector<16x8xf32>
    %12 = vector.shape_cast %5 : vector<16x8xf32> to vector<2x8x8xf32>
    %13 = vector.shape_cast %7 : vector<16x8xf32> to vector<2x8x8xf32>
    %14 = vector.shape_cast %9 : vector<16x8xf32> to vector<2x8x8xf32>
    %15 = vector.shape_cast %11 : vector<16x8xf32> to vector<2x8x8xf32>
    "tpu.trace_start"() <{level = 10 : i32, message = "bex,bey->bxy"}> : () -> ()
    %cst_16 = arith.constant dense<0.000000e+00> : vector<2x8x8xf32>
    %16 = tpu.matmul %12, %14, %cst_16 {dimension_numbers = #tpu.dot_dimension_numbers<[1], [1], [2], [2], [0, 0, 0, 2, 1, 2], [0], [0]>} : vector<2x8x8xf32>, vector<2x8x8xf32>, vector<2x8x8xf32> -> vector<2x8x8xf32>
    %cst_17 = arith.constant dense<0.000000e+00> : vector<2x8x8xf32>
    %17 = tpu.matmul %13, %15, %cst_17 {dimension_numbers = #tpu.dot_dimension_numbers<[1], [1], [2], [2], [0, 0, 0, 2, 1, 2], [0], [0]>} : vector<2x8x8xf32>, vector<2x8x8xf32>, vector<2x8x8xf32> -> vector<2x8x8xf32>
    "tpu.trace_stop"() : () -> ()
    %18 = arith.subf %16, %17 : vector<2x8x8xf32>
    %19 = math.tanh %18 : vector<2x8x8xf32>
    "tpu.trace_start"() <{level = 10 : i32, message = "bex,bey->bxy"}> : () -> ()
    %cst_18 = arith.constant dense<0.000000e+00> : vector<2x8x8xf32>
    %20 = tpu.matmul %12, %15, %cst_18 {dimension_numbers = #tpu.dot_dimension_numbers<[1], [1], [2], [2], [0, 0, 0, 2, 1, 2], [0], [0]>} : vector<2x8x8xf32>, vector<2x8x8xf32>, vector<2x8x8xf32> -> vector<2x8x8xf32>
    %cst_19 = arith.constant dense<0.000000e+00> : vector<2x8x8xf32>
    %21 = tpu.matmul %13, %14, %cst_19 {dimension_numbers = #tpu.dot_dimension_numbers<[1], [1], [2], [2], [0, 0, 0, 2, 1, 2], [0], [0]>} : vector<2x8x8xf32>, vector<2x8x8xf32>, vector<2x8x8xf32> -> vector<2x8x8xf32>
    "tpu.trace_stop"() : () -> ()
    %22 = arith.addf %20, %21 : vector<2x8x8xf32>
    %23 = math.tanh %22 : vector<2x8x8xf32>
    "tpu.trace_start"() <{level = 10 : i32, message = "bxy,bey->bxe"}> : () -> ()
    %cst_20 = arith.constant dense<0.000000e+00> : vector<2x8x8xf32>
    %24 = tpu.matmul %19, %14, %cst_20 {dimension_numbers = #tpu.dot_dimension_numbers<[2], [2], [1], [1], [0, 0, 0, 1, 1, 1], [0], [0]>} : vector<2x8x8xf32>, vector<2x8x8xf32>, vector<2x8x8xf32> -> vector<2x8x8xf32>
    %cst_21 = arith.constant dense<0.000000e+00> : vector<2x8x8xf32>
    %25 = tpu.matmul %23, %15, %cst_21 {dimension_numbers = #tpu.dot_dimension_numbers<[2], [2], [1], [1], [0, 0, 0, 1, 1, 1], [0], [0]>} : vector<2x8x8xf32>, vector<2x8x8xf32>, vector<2x8x8xf32> -> vector<2x8x8xf32>
    "tpu.trace_stop"() : () -> ()
    %26 = arith.subf %24, %25 : vector<2x8x8xf32>
    "tpu.trace_start"() <{level = 10 : i32, message = "bxy,bey->bxe"}> : () -> ()
    %cst_22 = arith.constant dense<0.000000e+00> : vector<2x8x8xf32>
    %27 = tpu.matmul %19, %15, %cst_22 {dimension_numbers = #tpu.dot_dimension_numbers<[2], [2], [1], [1], [0, 0, 0, 1, 1, 1], [0], [0]>} : vector<2x8x8xf32>, vector<2x8x8xf32>, vector<2x8x8xf32> -> vector<2x8x8xf32>
    %cst_23 = arith.constant dense<0.000000e+00> : vector<2x8x8xf32>
    %28 = tpu.matmul %23, %14, %cst_23 {dimension_numbers = #tpu.dot_dimension_numbers<[2], [2], [1], [1], [0, 0, 0, 1, 1, 1], [0], [0]>} : vector<2x8x8xf32>, vector<2x8x8xf32>, vector<2x8x8xf32> -> vector<2x8x8xf32>
    "tpu.trace_stop"() : () -> ()
    %29 = arith.addf %27, %28 : vector<2x8x8xf32>
    %30 = tpu.transpose %26, [1, 0, 2] : vector<2x8x8xf32> -> vector<8x2x8xf32>
    %31 = tpu.transpose %29, [1, 0, 2] : vector<2x8x8xf32> -> vector<8x2x8xf32>
    %c0_24 = arith.constant 0 : index
    %c0_25 = arith.constant 0 : index
    %c0_26 = arith.constant 0 : index
    %c0_27 = arith.constant 0 : index
    %32 = vector.load %arg8[%c0_24, %c0_25, %c0_26, %c0_27] : memref<1x8x8x8xf32, #tpu.memory_space<vmem>>, vector<1x8x8x8xf32>
    %33 = vector.shape_cast %32 : vector<1x8x8x8xf32> to vector<8x8x8xf32>
    %c0_28 = arith.constant 0 : index
    %c0_29 = arith.constant 0 : index
    %c0_30 = arith.constant 0 : index
    %c0_31 = arith.constant 0 : index
    %34 = vector.load %arg9[%c0_28, %c0_29, %c0_30, %c0_31] : memref<1x8x8x8xf32, #tpu.memory_space<vmem>>, vector<1x8x8x8xf32>
    %35 = vector.shape_cast %34 : vector<1x8x8x8xf32> to vector<8x8x8xf32>
    "tpu.trace_start"() <{level = 10 : i32, message = "xbe,xeo->xbo"}> : () -> ()
    %cst_32 = arith.constant dense<0.000000e+00> : vector<8x2x8xf32>
    %36 = tpu.matmul %30, %33, %cst_32 {dimension_numbers = #tpu.dot_dimension_numbers<[2], [1], [1], [2], [0, 0, 0, 1, 1, 2], [0], [0]>} : vector<8x2x8xf32>, vector<8x8x8xf32>, vector<8x2x8xf32> -> vector<8x2x8xf32>
    %cst_33 = arith.constant dense<0.000000e+00> : vector<8x2x8xf32>
    %37 = tpu.matmul %31, %35, %cst_33 {dimension_numbers = #tpu.dot_dimension_numbers<[2], [1], [1], [2], [0, 0, 0, 1, 1, 2], [0], [0]>} : vector<8x2x8xf32>, vector<8x8x8xf32>, vector<8x2x8xf32> -> vector<8x2x8xf32>
    "tpu.trace_stop"() : () -> ()
    %38 = arith.subf %36, %37 : vector<8x2x8xf32>
    "tpu.trace_start"() <{level = 10 : i32, message = "xbe,xeo->xbo"}> : () -> ()
    %cst_34 = arith.constant dense<0.000000e+00> : vector<8x2x8xf32>
    %39 = tpu.matmul %30, %35, %cst_34 {dimension_numbers = #tpu.dot_dimension_numbers<[2], [1], [1], [2], [0, 0, 0, 1, 1, 2], [0], [0]>} : vector<8x2x8xf32>, vector<8x8x8xf32>, vector<8x2x8xf32> -> vector<8x2x8xf32>
    %cst_35 = arith.constant dense<0.000000e+00> : vector<8x2x8xf32>
    %40 = tpu.matmul %31, %33, %cst_35 {dimension_numbers = #tpu.dot_dimension_numbers<[2], [1], [1], [2], [0, 0, 0, 1, 1, 2], [0], [0]>} : vector<8x2x8xf32>, vector<8x8x8xf32>, vector<8x2x8xf32> -> vector<8x2x8xf32>
    "tpu.trace_stop"() : () -> ()
    %41 = arith.addf %39, %40 : vector<8x2x8xf32>
    %42 = vector.shape_cast %38 : vector<8x2x8xf32> to vector<8x16xf32>
    %43 = vector.shape_cast %41 : vector<8x2x8xf32> to vector<8x16xf32>
    %c0_36 = arith.constant 0 : index
    %c0_37 = arith.constant 0 : index
    %44 = vector.load %arg10[%c0_36, %c0_37] : memref<8x128xf32, #tpu.memory_space<vmem>>, vector<8x128xf32>
    %cst_38 = arith.constant dense<0.000000e+00> : vector<16x128xf32>
    %45 = tpu.matmul %42, %44, %cst_38 {dimension_numbers = #tpu.dot_dimension_numbers<[0], [0], [1], [1], [0, 1, 1, 1], [], []>} : vector<8x16xf32>, vector<8x128xf32>, vector<16x128xf32> -> vector<16x128xf32>
    %c0_39 = arith.constant 0 : index
    %c0_40 = arith.constant 0 : index
    %46 = vector.load %arg11[%c0_39, %c0_40] : memref<8x128xf32, #tpu.memory_space<vmem>>, vector<8x128xf32>
    %cst_41 = arith.constant dense<0.000000e+00> : vector<16x128xf32>
    %47 = tpu.matmul %43, %46, %cst_41 {dimension_numbers = #tpu.dot_dimension_numbers<[0], [0], [1], [1], [0, 1, 1, 1], [], []>} : vector<8x16xf32>, vector<8x128xf32>, vector<16x128xf32> -> vector<16x128xf32>
    %48 = arith.subf %45, %47 : vector<16x128xf32>
    %49 = vector.shape_cast %48 : vector<16x128xf32> to vector<2x8x128xf32>
    %c0_42 = arith.constant 0 : index
    %c0_43 = arith.constant 0 : index
    %c0_44 = arith.constant 0 : index
    %c0_45 = arith.constant 0 : index
    %50 = vector.load %arg12[%c0_42, %c0_43, %c0_44, %c0_45] : memref<2x1x8x128xf32, #tpu.memory_space<vmem>>, vector<2x1x8x128xf32>
    %51 = vector.shape_cast %50 : vector<2x1x8x128xf32> to vector<2x8x128xf32>
    %52 = vector.shape_cast %49 : vector<2x8x128xf32> to vector<2x1x8x128xf32>
    tpu.vector_store %arg12[%c0_42, %c0_43, %c0_44, %c0_45], %52 {strides = array<i32>} : memref<2x1x8x128xf32, #tpu.memory_space<vmem>>, vector<2x1x8x128xf32>,
    return
  }
  func.func @transform_0(%arg0: i32, %arg1: i32) -> (i32, i32, i32) {
    %c0_i32 = arith.constant 0 : i32
    %c0_i32_0 = arith.constant 0 : i32
    return %arg0, %arg1, %c0_i32 : i32, i32, i32
  }
  func.func @transform_1(%arg0: i32, %arg1: i32) -> (i32, i32, i32) {
    %c0_i32 = arith.constant 0 : i32
    %c0_i32_0 = arith.constant 0 : i32
    return %arg0, %arg1, %c0_i32 : i32, i32, i32
  }
  func.func @transform_2(%arg0: i32, %arg1: i32) -> (i32, i32) {
    %c0_i32 = arith.constant 0 : i32
    %c0_i32_0 = arith.constant 0 : i32
    %c0_i32_1 = arith.constant 0 : i32
    return %c0_i32, %c0_i32_0 : i32, i32
  }
  func.func @transform_3(%arg0: i32, %arg1: i32) -> (i32, i32) {
    %c0_i32 = arith.constant 0 : i32
    %c0_i32_0 = arith.constant 0 : i32
    %c0_i32_1 = arith.constant 0 : i32
    return %c0_i32, %c0_i32_0 : i32, i32
  }
  func.func @transform_4(%arg0: i32, %arg1: i32) -> (i32, i32) {
    %c0_i32 = arith.constant 0 : i32
    %c0_i32_0 = arith.constant 0 : i32
    %c0_i32_1 = arith.constant 0 : i32
    return %c0_i32, %c0_i32_0 : i32, i32
  }
  func.func @transform_5(%arg0: i32, %arg1: i32) -> (i32, i32) {
    %c0_i32 = arith.constant 0 : i32
    %c0_i32_0 = arith.constant 0 : i32
    %c0_i32_1 = arith.constant 0 : i32
    return %c0_i32, %c0_i32_0 : i32, i32
  }
  func.func @transform_6(%arg0: i32, %arg1: i32) -> (i32, i32, i32, i32) {
    %c0_i32 = arith.constant 0 : i32
    %c0_i32_0 = arith.constant 0 : i32
    %c0_i32_1 = arith.constant 0 : i32
    %c0_i32_2 = arith.constant 0 : i32
    return %arg0, %c0_i32, %c0_i32_0, %c0_i32_1 : i32, i32, i32, i32
  }
  func.func @transform_7(%arg0: i32, %arg1: i32) -> (i32, i32, i32, i32) {
    %c0_i32 = arith.constant 0 : i32
    %c0_i32_0 = arith.constant 0 : i32
    %c0_i32_1 = arith.constant 0 : i32
    %c0_i32_2 = arith.constant 0 : i32
    return %arg0, %c0_i32, %c0_i32_0, %c0_i32_1 : i32, i32, i32, i32
  }
  func.func @transform_8(%arg0: i32, %arg1: i32) -> (i32, i32) {
    %c0_i32 = arith.constant 0 : i32
    %c0_i32_0 = arith.constant 0 : i32
    %c0_i32_1 = arith.constant 0 : i32
    return %c0_i32, %c0_i32_0 : i32, i32
  }
  func.func @transform_9(%arg0: i32, %arg1: i32) -> (i32, i32) {
    %c0_i32 = arith.constant 0 : i32
    %c0_i32_0 = arith.constant 0 : i32
    %c0_i32_1 = arith.constant 0 : i32
    return %c0_i32, %c0_i32_0 : i32, i32
  }
  func.func @transform_10(%arg0: i32, %arg1: i32) -> (i32, i32, i32, i32) {
    %c0_i32 = arith.constant 0 : i32
    %c0_i32_0 = arith.constant 0 : i32
    %c0_i32_1 = arith.constant 0 : i32
    return %arg1, %arg0, %c0_i32, %c0_i32_0 : i32, i32, i32, i32
  }
}

</mosaic_0001>

<bundles_post_ra>
// kernel: tpu_custom_call.1
= control target key start
LH: loop header
LB: loop body
LE: loop exit
PB: predicated region body
PF: predicated region fallthrough
CT: control target
= control target key end

     0   :  { %s6364_s0 = inlined_call_operand.vmem [shape: bf16[2,16,16], index: 0, kind: input, shape index: {}]   ;;  %s6365_s1 = inlined_call_operand.vmem [shape: bf16[2,16,16], index: 1, kind: input, shape index: {}]   ;;  %s6366_s2 = inlined_call_operand.vmem [shape: bf16[16,8], index: 2, kind: input, shape index: {}]   ;;  %s6367_s3 = inlined_call_operand.vmem [shape: bf16[16,8], index: 3, kind: input, shape index: {}]   ;;  %s6368_s4 = inlined_call_operand.vmem [shape: bf16[16,8], index: 4, kind: input, shape index: {}]   ;;  %s6369_s5 = inlined_call_operand.vmem [shape: bf16[16,8], index: 5, kind: input, shape index: {}]   ;;  %s6370_s6 = inlined_call_operand.hbm [shape: f32[2,8,8,8], index: 6, kind: input, shape index: {}]   ;;  %s6371_s7 = inlined_call_operand.hbm [shape: f32[2,8,8,8], index: 7, kind: input, shape index: {}]   ;;  %s6372_s8 = inlined_call_operand.vmem [shape: f32[8,128], index: 8, kind: input, shape index: {}]   ;;  %s6373_s9 = inlined_call_operand.vmem [shape: f32[8,128], index: 9, kind: input, shape index: {}]   ;;  %s6374_s10 = inlined_call_operand.hbm [shape: f32[2,2,8,128], index: 10, kind: output, shape index: {}]  }
   0x1   :  { %6383 = sst [smem:[#allocation17_spill]] %s6370_s6 }
   0x2   :  { %6384 = sst [smem:[#allocation18_spill]] %s6374_s10 }
   0x3   :  { %15 = vsyncpa [#allocation3], 0 }
   0x4   :  { %17 = vsyncpa [#allocation3 + $0x1], 0 }
   0x5   :  { %18 = vsyncpa [#allocation6], 0 }
   0x6   :  { %20 = vsyncpa [#allocation6 + $0x1], 0 }
   0x7   :  { %21 = vsyncpa [#allocation4], 0 }
   0x8   :  { %23 = vsyncpa [#allocation4 + $0x1], 0  ;;  %s5739_s13 = smov 0   ;;  %s5741_s14 = smov 0  }
   0x9   :  { %s5743_s15 = smov 0   ;;  %s5745_s16 = smov 0  }
   0xa   :  { %s5747_s17 = smov 0   ;;  %s5749_s18 = smov 0  }
   0xb LB: > { %6385 = sst [smem:[#allocation11_spill]] %s5650_s13  ;;  %s4960_s19 = sadd.s32 4294967295, %s5670_s18   ;;  %s5670_s18 = sphi %s5749_s18, %s29_s18   ;;  %s5666_s17 = sphi %s5747_s17, %s6409_s17   ;;  %s5662_s16 = sphi %s5745_s16, %s6408_s16   ;;  %s5658_s15 = sphi %s5743_s15, %s6404_s15   ;;  %s5654_s14 = sphi %s5741_s14, %s6407_s14   ;;  %s5650_s13 = sphi %s5739_s13, %s6406_s13  }
   0xc   : > { %6386 = sst [smem:[#allocation12_spill]] %s5658_s15  ;;  %s4961_s20 = sadd.s32 4294967294, %s5670_s18  }
   0xd   : > { %s41_s21 = sadd.s32 1, %s5666_s17  ;;  %s188_s22 = sadd.s32 1, %s5658_s15 }
   0xe   : > { %p43_p0 = scmp.ge.s32.totalorder %s41_s21, 2  ;;  %p195_p1 = scmp.ne.s32.totalorder %s5658_s15, %s5654_s14 }
   0xf   : > { %p196_p2 = scmp.eq.s32.totalorder %s5670_s18, 0  ;;  %p201_p3 = scmp.ne.s32.totalorder %s5654_s14, %s5650_s13 }
  0x10   : > { %s6411_s21 = smov (%p43_p0, %s41_s21), 0  ;;  %p202_p5 = scmp.eq.s32.totalorder %s4960_s19, 0 }
  0x11   : > { %6387 = sst [smem:[#allocation13_spill]] %s6411_s21  ;;  %p5780_p4 = por %p196_p2, %p195_p1 }
  0x12   : > { %s185_s24 = ssub.s32 %s5666_s17, %s6411_s21  ;;  %p295_p6 = scmp.eq.s32.totalorder %s4960_s19, 1 }
  0x13   : > { %p186_p7 = scmp.eq.s32.totalorder %s185_s24, 0  ;;  %p5786_p8 = por %p202_p5, %p201_p3 }
  0x14   : > { %p5790_p9 = por %p295_p6, %p195_p1  ;;  %p301_p10 = scmp.eq.s32.totalorder %s4961_s20, 1 }
  0x15   : > { %s5795_s27 = scalar_select %p186_p7, %s5658_s15, %s188_s22  }
  0x16   : > { %s6390_s26 = scalar_select %p5790_p9, 1, 0 }
  0x17   : > { %6392 = sst [smem:[#allocation15_spill]] %s5795_s27  ;;  %p5797_p11 = por %p301_p10, %p201_p3 }
  0x18   : > { %6391 = sst [smem:[#allocation14_spill]] %s6390_s26  ;;  %p4963_p12 = scmp.ge.s32.totalorder %s5670_s18, 2 }
  0x19   : > { %s6393_s28 = scalar_select %p5797_p11, 1, 0 }
  0x1a   : > { %p5457_p13 = scmp.lt.s32.totalorder %s5670_s18, 2  ;;  %s5804_s29 = sand.u32 1, %s5658_s15  }
  0x1b   : > { %6394 = sst [smem:[#allocation16_spill]] %s6393_s28  ;;  %s6377_s30 = sshll.u32 %s5804_s29, 6 }
  0x1c   : > { %s5052_s11 = sshll.u32 %s5666_s17, 10  ;;  %s6395_s6 = sld [smem:[#allocation17_spill]] }
  0x1d   : > { %s369_s22 = scalar_lea.vmem [#allocation2], %s6377_s30  ;;  %p5817_p0 = pnand %p5457_p13, %p5780_p4 }
  0x1e   : > { %s376_s24 = sshll.u32 %s369_s22, 4  ;;  %p4970_p1 = scmp.ge.s32.totalorder %s5670_s18, 1  ;;  %s377_s24 = int_to_ptr.vmem [resolvable:$true] %s376_s24 }
  0x1f   : > { %s366_s27 = scalar_lea.sflag [#allocation3], %s5804_s29  ;;  %p5532_p2 = pneg %p5817_p0 }
  0x20   : > { %s5543_s15 = scalar_lea.vmem %s377_s24, 1024  ;;  %s5672_s12 = smov [#allocation2]  }
  0x21   : > { %p5544_p3 = scmp.ne.s32.totalorder %s377_s24, %s5543_s15  ;;  %s5548_s19 = sshll.u32 %s5672_s12, 4  ;;  %s5549_s19 = int_to_ptr.vmem [resolvable:$false] %s5548_s19 }
  0x22   : > { %s375_s20 = scalar_lea.hbm %s6395_s6, %s5052_s11  ;;  %s5550_s23 = scalar_lea.vmem %s5549_s19, 2048 }
  0x23   : > { %p5546_p5 = pnand %p5544_p3, %p5532_p2  ;;  %p5551_p4 = scmp.lt.s32.totalorder %s377_s24, %s5549_s19 }
  0x24   : > { %p5552_p7 = scmp.lt.s32.totalorder %s5550_s23, %s5543_s15 }
  0x25   : > { %p5547_p6 = pneg %p5546_p5 }
  0x26   : > { %p5553_p10 = por %p5552_p7, %p5551_p4 }
  0x28   : > { %p5554_p13 = pnand %p5553_p10, %p5547_p6 }
  0x2a   : > { %5557 = shalt.err (!%p5554_p13)
}
  0x2b   : > { %s5673_s22 = smov 128   ;;  %s5674_s30 = smov 8  }
  0x2c   : > { %5449 = dma.hbm_to_vmem [thread:$0]  (!%p5817_p0), %s375_s20, 1024, %s377_s24, %s366_s27, %s5673_s22, %s5673_s22, %s5674_s30  }
  0x2d   : > { %p405_p3 = scmp.lt.s32.totalorder %s5670_s18, 3  ;;  %s396_s15 = scalar_lea.hbm %s6371_s7, %s5052_s11 }
  0x2e   : > { %s6398_s23 = sshll.u32 %s5804_s29, 6  ;;  %s387_s10 = scalar_lea.sflag [#allocation6], %s5804_s29 }
  0x2f   : > { %p5838_p5 = pnand %p4970_p1, %p405_p3  ;;  %s390_s28 = scalar_lea.vmem [#allocation5], %s6398_s23 }
  0x30   : > { %s397_s13 = sshll.u32 %s390_s28, 4  ;;  %s5675_s27 = smov [#allocation5]   ;;  %s398_s13 = int_to_ptr.vmem [resolvable:$true] %s397_s13 }
  0x31   : > { %s5571_s26 = scalar_lea.vmem %s398_s13, 1024  ;;  %s5576_s20 = sshll.u32 %s5675_s27, 4  ;;  %s5577_s20 = int_to_ptr.vmem [resolvable:$false] %s5576_s20 }
  0x32   : > { %p5572_p6 = scmp.ne.s32.totalorder %s398_s13, %s5571_s26  ;;  %s5578_s6 = scalar_lea.vmem %s5577_s20, 2048 }
  0x33   : > { %p5579_p10 = scmp.lt.s32.totalorder %s398_s13, %s5577_s20  ;;  %p5580_p1 = scmp.lt.s32.totalorder %s5578_s6, %s5571_s26 }
  0x34   : > { %p5574_p4 = pnand %p5572_p6, %p5532_p2 }
  0x35   : > { %p5581_p13 = por %p5580_p1, %p5579_p10 }
  0x36   : > { %p5575_p7 = pneg %p5574_p4 }
  0x38   : > { %p5582_p3 = pnand %p5581_p13, %p5575_p7 }
  0x3a   : > { %5585 = shalt.err (!%p5582_p3)
}
  0x3b   : > { %5452 = dma.hbm_to_vmem [thread:$0]  (!%p5817_p0), %s396_s15, 1024, %s398_s13, %s387_s10, %s5673_s22, %s5673_s22, %s5674_s30  }
  0x3c   : > { %409 = sbr.rel (%p5838_p5) target bundleno = 1542 (0x606), region = 60  ;;  %s5853_s28 = sand.u32 (!%p5838_p5), 1, %s5654_s14  }
  0x3d   : > { %s4971_s29 = sshll.u32 (!%p5838_p5), %s5853_s28, 6  ;;  %s412_s11 = scalar_lea.sflag (!%p5838_p5), [#allocation3], %s5853_s28 }
  0x3e   : > { %s5857_s24 = scalar_lea.vmem (!%p5838_p5), [#allocation2], %s4971_s29 }
  0x41   : > { %5637 = dma.done.wait (%p5786_p8), %s412_s11, 1024  }
  0x42   : > { %5639 = vsyncadd (%p5786_p8), %s412_s11, 4294966272  ;;  %s421_s10 = scalar_lea.sflag [#allocation6], %s5853_s28  ;;  %s5864_s13 = scalar_lea.vmem [#allocation5], %s4971_s29 }
  0x43   : > { %5641 = dma.done.wait (%p5786_p8), %s421_s10, 1024  }
  0x44   : > { %5643 = vsyncadd (%p5786_p8), %s421_s10, 4294966272  ;;  %p485_p0 = scmp.lt.s32.totalorder %s5662_s16, 1  ;;  %v5676_v0 = vmov 0.0   ;;  %vm5677_vm0 = vmmov 0   ;;  %v5516_v1 = vld [vmem:[%s6366_s2] sm:$0xff]   ;;  %vm523_vm1 = vcmask 130048   ;;  %v2020_v57 = vlaneseq }
  0x45   : > { %5166 = vmatprep.subr.bf16.mxu0 %v5676_v0  ;;  %5172 = vmatprep.subr.bf16.mxu1 %v5676_v0  ;;  %v5517_v2 = vld [vmem:[%s6367_s3] sm:$0xff]   ;;  %vm755_vm2 = vcmask 64512   ;;  %v6013_v52 = vld [vmem:[%s5857_s24 + $0x8] sm:$0xff]  ;;  %v5678_v55 = vmov 1983009808   ;;  %s4973_s22 = sshll.u32 %s5853_s28, 4 }
  0x46   : > { %5168 = vmatprep.mubr.msk.bf16.mxu0 %vm5677_vm0, %v5676_v0  ;;  %5174 = vmatprep.mubr.msk.bf16.mxu1 %vm5677_vm0, %v5676_v0  ;;  %s486_s21 = scalar_select %p485_p0, %s5662_s16, 1  ;;  %v5519_v4 = vld [vmem:[%s6368_s4] sm:$0xff]   ;;  %v2018_v56 = vunpack.c.l.s4 %v5678_v55  ;;  %v5679_v60 = vmov 1934713408   ;;  %v2021_v63 = vshrl.u32 %v2020_v57, 7  ;;  %v6120_v55 = vld [vmem:[%s5864_s13 + $0x8] sm:$0xff] }
  0x47   : > { %5167 = vmatpush3.bf16.msra.mxu0 %v5516_v1  ;;  %5173 = vmatpush3.bf16.msra.mxu1 %v5517_v2  ;;  %v5521_v5 = vld [vmem:[%s6369_s5] sm:$0xff]   ;;  %v2049_v61 = vunpack.c.l.s4 %v5679_v60  ;;  %v6132_v57 = vld [vmem:[%s5864_s13 + $0x10] sm:$0xff]  ;;  %s5049_s23 = sshll.u32 %s5662_s16, 7  ;;  %s4803_s11 = scalar_lea.sflag [#allocation4], %s5853_s28 }
  0x48   : > { %s5054_s26 = sshll.u32 %s486_s21, 3  ;;  %5178 = vmatprep.subr.bf16.mxu0 %v5676_v0  ;;  %5184 = vmatprep.subr.bf16.mxu1 %v5676_v0  ;;  %v6009_v51 = vld [vmem:[%s5857_s24] sm:$0xff]  ;;  %v2019_v62 = vunpack.c.0.s8 %v2018_v56  ;;  %s5681_s16 = smov [#allocation7]  }
  0x49   : > { %s492_s15 = scalar_lea.vmem %s6364_s0, %s5054_s26  ;;  %s502_s6 = scalar_lea.vmem %s6365_s1, %s5054_s26 }
  0x4a   : > { %v5518_v3 = vld [vmem:[%s492_s15] sm:$0xff]   ;;  %s483_s15 = scalar_lea.vmem [#allocation7], %s4973_s22  ;;  %s5590_s21 = sshll.u32 %s5681_s16, 4  ;;  %s5591_s21 = int_to_ptr.vmem [resolvable:$false] %s5590_s21 }
  0x4b   : > { %5169 = vmatmul.mubr.msk.bf16.vlgmr.msra.gmra.mxu0 %vm523_vm1, %v5518_v3  ;;  %5175 = vmatmul.mubr.msk.bf16.vlgmr.msra.gmra.mxu1 %vm523_vm1, %v5518_v3  ;;  %v5520_v6 = vld [vmem:[%s502_s6] sm:$0xff]   ;;  %v2050_v3 = vunpack.c.0.s8 %v2049_v61  ;;  %v6140_v61 = vld [vmem:[%s5864_s13 + $0x18] sm:$0xff]  ;;  %s4818_s19 = sshll.u32 %s483_s15, 4  ;;  %s6400_s6 = sld [smem:[#allocation18_spill]]  ;;  %s6310_s19 = int_to_ptr.vmem [resolvable:$true] %s4818_s19 }
  0x4c   : > { %5179 = vmatpush3.bf16.msra.mxu0 %v5519_v4  ;;  %5180 = vmatprep.mubr.msk.bf16.mxu0 %vm5677_vm0, %v5676_v0  ;;  %s5586_s10 = scalar_lea.vmem %s6310_s19, 256  ;;  %p5593_p6 = scmp.lt.s32.totalorder %s6310_s19, %s5591_s21 }
  0x4d   : > { %5185 = vmatpush3.bf16.msra.mxu1 %v5521_v5  ;;  %5186 = vmatprep.mubr.msk.bf16.mxu1 %vm5677_vm0, %v5676_v0  ;;  %v6018_v5 = vsub.s32 %v2019_v62, %v2021_v63  ;;  %v6150_v62 = vld [vmem:[%s5864_s13 + $0x20] sm:$0xff]  ;;  %p5587_p8 = scmp.ne.s32.totalorder %s6310_s19, %s5586_s10 }
  0x4e   : > { %5190 = vmatprep.subr.mxu0 %v5676_v0  ;;  %5195 = vmatprep.subr.mxu1 %v5676_v0 }
  0x4f   : > { %p5588_p2 = pnand %p5587_p8, %p5790_p9 }
  0x51   : > { %s6315_s29 = scalar_lea.hbm %s6400_s6, %s5049_s23  ;;  %p5589_p5 = pneg %p5588_p2 }
  0x53   : > { %5181 = vmatmul.mubr.msk.bf16.vlgmr.msra.gmra.mxu0 %vm523_vm1, %v5520_v6  ;;  %5187 = vmatmul.mubr.msk.bf16.vlgmr.msra.gmra.mxu1 %vm523_vm1, %v5520_v6 }
  0x54   : > { %5192 = vmatprep.mubr.msk.f32.mxu0 %vm5677_vm0, %v5676_v0  ;;  %5197 = vmatprep.mubr.msk.f32.mxu1 %vm5677_vm0, %v5676_v0 }
 0x10b   : > { %v561_v7 = vpop.f32.mrf.mxu0  ;;  %v610_v8 = vpop.f32.mrf.mxu1 }
 0x10c   : > { %723 = vxpose.xlu0.b32.start.end [1/1] (short) (narrow) %v561_v7, 8  ;;  %934 = vxpose.xlu1.b32.start.end [1/1] (short) (narrow) %v610_v8, 8 }
 0x10d   : > { %v5170_v9 = vpop.f32.mrf.mxu0  ;;  %v5176_v10 = vpop.f32.mrf.mxu1 }
 0x10e   : > { %v6020_v9 = vsub.s32 %v2050_v3, %v2021_v63  ;;  %v6158_v3 = vld [vmem:[%s5864_s13 + $0x28] sm:$0xff] }
 0x10f   : > { %v564_v11 = vpop.f32.mrf.mxu0  ;;  %v613_v12 = vpop.f32.mrf.mxu1 }
 0x110   : > { %829 = vxpose.xlu0.b32.start.end [1/1] (short) (narrow) %v564_v11, 8  ;;  %1039 = vxpose.xlu1.b32.start.end [1/1] (short) (narrow) %v613_v12, 8 }
 0x111   : > { %v5171_v13 = vpop.f32.mrf.mxu0  ;;  %v5177_v14 = vpop.f32.mrf.mxu1 }
 0x113   : > { %v5912_v15 = vpop.f32.mrf.mxu0  ;;  %v5915_v16 = vpop.f32.mrf.mxu1 }
 0x114   : > { %5191 = vmatpush3.msra.mxu0 %v5912_v15 }
 0x115   : > { %v5182_v17 = vpop.f32.mrf.mxu0  ;;  %5200 = vmatprep.subr.mxu0 %v5676_v0  ;;  %v5188_v18 = vpop.f32.mrf.mxu1 }
 0x117   : > { %v5918_v19 = vpop.f32.mrf.mxu0  ;;  %v5921_v20 = vpop.f32.mrf.mxu1 }
 0x118   : > { %5196 = vmatpush3.msra.mxu1 %v5918_v19 }
 0x119   : > { %v5183_v21 = vpop.f32.mrf.mxu0  ;;  %5205 = vmatprep.subr.mxu1 %v5676_v0  ;;  %v5189_v22 = vpop.f32.mrf.mxu1 }
 0x188   : > { %v739_v23 = vpop.trf.xlu0  ;;  %v950_v24 = vpop.trf.xlu1 }
 0x189   : > { %5193 = vmatmul.mubr.msk.f32.vlgmr.msra.gmra.mxu0 %vm755_vm2, %v739_v23 }
 0x18a   : > { %5201 = vmatpush3.msra.mxu0 %v5915_v16  ;;  %5202 = vmatprep.mubr.msk.f32.mxu0 %vm5677_vm0, %v5676_v0 }
 0x18b   : > { %5210 = vmatprep.subr.mxu0 %v5676_v0 }
 0x18c   : > { %v845_v25 = vpop.trf.xlu0  ;;  %v1055_v26 = vpop.trf.xlu1 }
 0x18d   : > { %5198 = vmatmul.mubr.msk.f32.vlgmr.msra.gmra.mxu1 %vm755_vm2, %v845_v25  ;;  %5203 = vmatmul.mubr.msk.f32.vlgmr.msra.gmra.mxu0 %vm755_vm2, %v950_v24 }
 0x18e   : > { %5206 = vmatpush3.msra.mxu1 %v5921_v20  ;;  %5211 = vmatpush3.msra.mxu0 %v5912_v15 }
 0x18f   : > { %5207 = vmatprep.mubr.msk.f32.mxu1 %vm5677_vm0, %v5676_v0  ;;  %5212 = vmatprep.mubr.msk.f32.mxu0 %vm5677_vm0, %v5676_v0 }
 0x190   : > { %5215 = vmatprep.subr.mxu1 %v5676_v0  ;;  %5220 = vmatprep.subr.mxu0 %v5676_v0 }
 0x191   : > { %5208 = vmatmul.mubr.msk.f32.vlgmr.msra.gmra.mxu1 %vm755_vm2, %v1055_v26  ;;  %5213 = vmatmul.mubr.msk.f32.vlgmr.msra.gmra.mxu0 %vm755_vm2, %v950_v24 }
 0x192   : > { %5216 = vmatpush3.msra.mxu1 %v5918_v19  ;;  %5221 = vmatpush3.msra.mxu0 %v5915_v16 }
 0x193   : > { %5217 = vmatprep.mubr.msk.f32.mxu1 %vm5677_vm0, %v5676_v0  ;;  %5222 = vmatprep.mubr.msk.f32.mxu0 %vm5677_vm0, %v5676_v0 }
 0x194   : > { %5225 = vmatprep.subr.mxu1 %v5676_v0  ;;  %5230 = vmatprep.subr.mxu0 %v5676_v0 }
 0x195   : > { %5218 = vmatmul.mubr.msk.f32.vlgmr.msra.gmra.mxu1 %vm755_vm2, %v1055_v26  ;;  %5223 = vmatmul.mubr.msk.f32.vlgmr.msra.gmra.mxu0 %vm755_vm2, %v739_v23 }
 0x196   : > { %5226 = vmatpush3.msra.mxu1 %v5921_v20  ;;  %5231 = vmatpush3.xpose.msk.msra.mxu0 %vm755_vm2, %v5912_v15 }
 0x197   : > { %5227 = vmatprep.mubr.msk.f32.mxu1 %vm5677_vm0, %v5676_v0  ;;  %5235 = vmatprep.subr.mxu1 %v5676_v0 }
 0x198   : > { %5232 = vmatprep.mubr.msk.f32.mxu0 %vm5677_vm0, %v5676_v0  ;;  %5240 = vmatprep.subr.mxu0 %v5676_v0 }
 0x199   : > { %5228 = vmatmul.mubr.msk.f32.vlgmr.msra.gmra.mxu1 %vm755_vm2, %v845_v25  ;;  %v6032_v25 = vld [vmem:[%s5857_s24 + $0x10] sm:$0xff] }
 0x19a   : > { %5236 = vmatpush3.xpose.msk.msra.mxu1 %vm755_vm2, %v5918_v19  ;;  %5237 = vmatprep.mubr.msk.f32.mxu1 %vm5677_vm0, %v5676_v0 }
 0x19b   : > { %5245 = vmatprep.subr.mxu1 %v5676_v0 }
 0x249   : > { %v825_v27 = vpop.f32.mrf.mxu0 }
 0x24b   : > { %v5194_v28 = vpop.f32.mrf.mxu0 }
 0x24d   : > { %v930_v29 = vpop.f32.mrf.mxu1  ;;  %v1035_v30 = vpop.f32.mrf.mxu0 }
 0x24e   : > { %v1144_v31 = vsub.f32 %v825_v27, %v1035_v30  ;;  %v6044_v30 = vld [vmem:[%s5857_s24 + $0x18] sm:$0xff] }
 0x24f   : > { %v5199_v32 = vpop.f32.mrf.mxu1  ;;  %v5204_v33 = vpop.f32.mrf.mxu0 }
 0x250   : > { %5522 = vtanh.f32 %v1144_v31 }
 0x251   : > { %v1140_v34 = vpop.f32.mrf.mxu1  ;;  %v1214_v35 = vpop.f32.mrf.mxu0 }
 0x252   : > { %v1145_v36 = vsub.f32 %v930_v29, %v1140_v34  ;;  %v6053_v34 = vld [vmem:[%s5857_s24 + $0x20] sm:$0xff] }
 0x253   : > { %v5209_v37 = vpop.f32.mrf.mxu1  ;;  %v5214_v38 = vpop.f32.mrf.mxu0 }
 0x254   : > { %5524 = vtanh.f32 %v1145_v36 }
 0x255   : > { %v1284_v39 = vpop.f32.mrf.mxu1  ;;  %v1354_v40 = vpop.f32.mrf.mxu0 }
 0x256   : > { %v1355_v41 = vadd.f32 %v1354_v40, %v1214_v35 }
 0x257   : > { %v5219_v42 = vpop.f32.mrf.mxu1  ;;  %v5224_v43 = vpop.f32.mrf.mxu0 }
 0x258   : > { %5526 = vtanh.f32 %v1355_v41  ;;  %v6084_v42 = vld [vmem:[%s5857_s24 + $0x30] sm:$0xff] }
 0x259   : > { %v1424_v44 = vpop.f32.mrf.mxu1 }
 0x25a   : > { %v1425_v45 = vadd.f32 %v1424_v44, %v1284_v39  ;;  %v6070_v39 = vld [vmem:[%s5857_s24 + $0x28] sm:$0xff] }
 0x25b   : > { %v5229_v46 = vpop.f32.mrf.mxu1 }
 0x25c   : > { %5528 = vtanh.f32 %v1425_v45  ;;  %v6096_v46 = vld [vmem:[%s5857_s24 + $0x38] sm:$0xff]  ;;  %s5680_s24 = smov 8  }
 0x25d   : > { %v5523_v47 = vpop.eup %5522 }
 0x25e   : > { %5233 = vmatmul.mubr.msk.f32.vlgmr.msra.gmra.mxu0 %vm755_vm2, %v5523_v47 }
 0x25f   : > { %5241 = vmatpush3.xpose.msk.msra.mxu0 %vm755_vm2, %v5915_v16  ;;  %5242 = vmatprep.mubr.msk.f32.mxu0 %vm5677_vm0, %v5676_v0 }
 0x260   : > { %5250 = vmatprep.subr.mxu0 %v5676_v0 }
 0x261   : > { %v5525_v48 = vpop.eup %5524 }
 0x262   : > { %5238 = vmatmul.mubr.msk.f32.vlgmr.msra.gmra.mxu1 %vm755_vm2, %v5525_v48 }
 0x263   : > { %5246 = vmatpush3.xpose.msk.msra.mxu1 %vm755_vm2, %v5921_v20  ;;  %5247 = vmatprep.mubr.msk.f32.mxu1 %vm5677_vm0, %v5676_v0 }
 0x264   : > { %5255 = vmatprep.subr.mxu1 %v5676_v0 }
 0x265   : > { %v5527_v49 = vpop.eup %5526 }
 0x266   : > { %5243 = vmatmul.mubr.msk.f32.vlgmr.msra.gmra.mxu0 %vm755_vm2, %v5527_v49 }
 0x267   : > { %5251 = vmatpush3.xpose.msk.msra.mxu0 %vm755_vm2, %v5912_v15  ;;  %5252 = vmatprep.mubr.msk.f32.mxu0 %vm5677_vm0, %v5676_v0 }
 0x268   : > { %5260 = vmatprep.subr.mxu0 %v5676_v0 }
 0x269   : > { %v5529_v50 = vpop.eup %5528 }
 0x26a   : > { %5248 = vmatmul.mubr.msk.f32.vlgmr.msra.gmra.mxu1 %vm755_vm2, %v5529_v50  ;;  %5253 = vmatmul.mubr.msk.f32.vlgmr.msra.gmra.mxu0 %vm755_vm2, %v5527_v49  ;;  %v6111_v49 = vld [vmem:[%s5864_s13] sm:$0xff] }
 0x26b   : > { %5256 = vmatpush3.xpose.msk.msra.mxu1 %vm755_vm2, %v5918_v19  ;;  %5261 = vmatpush3.xpose.msk.msra.mxu0 %vm755_vm2, %v5915_v16 }
 0x26c   : > { %5257 = vmatprep.mubr.msk.f32.mxu1 %vm5677_vm0, %v5676_v0  ;;  %5262 = vmatprep.mubr.msk.f32.mxu0 %vm5677_vm0, %v5676_v0 }
 0x26d   : > { %5265 = vmatprep.subr.mxu1 %v5676_v0  ;;  %5270 = vmatprep.subr.mxu0 %v5676_v0 }
 0x26e   : > { %5258 = vmatmul.mubr.msk.f32.vlgmr.msra.gmra.mxu1 %vm755_vm2, %v5529_v50  ;;  %5263 = vmatmul.mubr.msk.f32.vlgmr.msra.gmra.mxu0 %vm755_vm2, %v5523_v47 }
 0x26f   : > { %5266 = vmatpush3.xpose.msk.msra.mxu1 %vm755_vm2, %v5921_v20  ;;  %5267 = vmatprep.mubr.msk.f32.mxu1 %vm5677_vm0, %v5676_v0 }
 0x270   : > { %5275 = vmatprep.subr.mxu1 %v5676_v0  ;;  %5272 = vmatprep.mubr.msk.f32.mxu0 %vm5677_vm0, %v5676_v0 }
 0x271   : > { %5271 = vmatpush3.msra.mxu0 %v6009_v51 }
 0x272   : > { %5268 = vmatmul.mubr.msk.f32.vlgmr.msra.gmra.mxu1 %vm755_vm2, %v5525_v48  ;;  %5280 = vmatprep.subr.mxu0 %v5676_v0 }
 0x273   : > { %5277 = vmatprep.mubr.msk.f32.mxu1 %vm5677_vm0, %v5676_v0  ;;  %5276 = vmatpush3.msra.mxu1 %v6013_v52 }
 0x274   : > { %5285 = vmatprep.subr.mxu1 %v5676_v0 }
 0x31e   : > { %v1502_v53 = vpop.f32.mrf.mxu0 }
 0x320   : > { %v5234_v54 = vpop.f32.mrf.mxu0 }
 0x322   : > { %v1578_v58 = vpop.f32.mrf.mxu1 }
 0x324   : > { %v5239_v59 = vpop.f32.mrf.mxu1 }
 0x326   : > { %v1654_v1 = vpop.f32.mrf.mxu0 }
 0x327   : > { %v1734_v4 = vsub.f32 %v1502_v53, %v1654_v1 }
 0x328   : > { %v5244_v2 = vpop.f32.mrf.mxu0 }
 0x329   : > { %v2016_v12 = vcombine.high %v1734_v4, %v5676_v0  ;;  %v2023_v13 = vrot.slane %v1734_v4, %v6018_v5  ;;  %v6168_v4 = vld [vmem:[%s5864_s13 + $0x30] sm:$0xff] }
 0x32a   : > { %v1730_v6 = vpop.f32.mrf.mxu1  ;;  %v1802_v7 = vpop.f32.mrf.mxu0 }
 0x32b   : > { %v1735_v8 = vsub.f32 %v1578_v58, %v1730_v6  ;;  %v2030_v23 = vrot.slane %v2016_v12, %v6018_v5 }
 0x32c   : > { %v5249_v10 = vpop.f32.mrf.mxu1  ;;  %v5254_v11 = vpop.f32.mrf.mxu0 }
 0x32d   : > { %v2031_v14 = vcombine.high %v1735_v8, %v5676_v0  ;;  %v2038_v15 = vrot.slane %v1735_v8, %v6018_v5  ;;  %v6176_v8 = vld [vmem:[%s5864_s13 + $0x38] sm:$0xff]  ;;  %s5592_s13 = scalar_lea.vmem %s5591_s21, 512 }
 0x32e   : > { %v1872_v16 = vpop.f32.mrf.mxu1  ;;  %v1942_v17 = vpop.f32.mrf.mxu0  ;;  %p5594_p4 = scmp.lt.s32.totalorder %s5592_s13, %s5586_s10 }
 0x32f   : > { %v2045_v18 = vrot.slane %v2031_v14, %v6018_v5  ;;  %v2046_v19 = vcombine.low %v2023_v13, %v2038_v15  ;;  %v2047_v20 = vcombine.high %v2023_v13, %v2038_v15  ;;  %v1943_v33 = vadd.f32 %v1942_v17, %v1802_v7 }
 0x330   : > { %v5259_v21 = vpop.f32.mrf.mxu1  ;;  %v5264_v22 = vpop.f32.mrf.mxu0  ;;  %p5595_p7 = por %p5594_p4, %p5593_p6 }
 0x331   : > { %v6029_v24 = vrot.slane %v2046_v19, %v6020_v9  ;;  %v6035_v27 = vrot.slane %v2047_v20, %v6020_v9  ;;  %v2062_v28 = vcombine.low %v2030_v23, %v2045_v18  ;;  %v2063_v35 = vcombine.high %v2030_v23, %v2045_v18 }
 0x332   : > { %v2012_v26 = vpop.f32.mrf.mxu1  ;;  %v2089_v40 = vrot.slane %v1943_v33, %v6018_v5  ;;  %v2082_v47 = vcombine.high %v1943_v33, %v5676_v0  ;;  %p5596_p10 = pnand %p5595_p7, %p5589_p5 }
 0x333   : > { %v6039_v29 = vcombine.high %v6029_v24, %v5676_v0  ;;  %5273 = vmatmul.mubr.msk.f32.vlgmr.msra.gmra.mxu0 %vm755_vm2, %v6029_v24  ;;  %v2013_v31 = vadd.f32 %v2012_v26, %v1872_v16  ;;  %v6059_v36 = vrot.slane %v2062_v28, %v6020_v9  ;;  %v6063_v37 = vcombine.high %v6035_v27, %v5676_v0 }
 0x334   : > { %v5269_v32 = vpop.f32.mrf.mxu1  ;;  %5281 = vmatpush3.msra.mxu0 %v6032_v25  ;;  %5282 = vmatprep.mubr.msk.f32.mxu0 %vm5677_vm0, %v5676_v0  ;;  %v6080_v41 = vrot.slane %v2063_v35, %v6020_v9  ;;  %v2096_v56 = vrot.slane %v2082_v47, %v6018_v5 }
 0x335   : > { %5278 = vmatmul.mubr.msk.f32.vlgmr.msra.gmra.mxu1 %vm755_vm2, %v6039_v29  ;;  %5290 = vmatprep.subr.mxu0 %v5676_v0  ;;  %v2104_v38 = vrot.slane %v2013_v31, %v6018_v5  ;;  %v2097_v43 = vcombine.high %v2013_v31, %v5676_v0  ;;  %v6093_v45 = vcombine.high %v6059_v36, %v5676_v0 }
 0x336   : > { %5286 = vmatpush3.msra.mxu1 %v6044_v30  ;;  %5287 = vmatprep.mubr.msk.f32.mxu1 %vm5677_vm0, %v5676_v0  ;;  %v6108_v48 = vcombine.high %v6080_v41, %v5676_v0 }
 0x337   : > { %5283 = vmatmul.mubr.msk.f32.vlgmr.msra.gmra.mxu0 %vm755_vm2, %v6035_v27  ;;  %5295 = vmatprep.subr.mxu1 %v5676_v0  ;;  %v2112_v44 = vcombine.low %v2089_v40, %v2104_v38  ;;  %v2111_v50 = vrot.slane %v2097_v43, %v6018_v5  ;;  %v2113_v53 = vcombine.high %v2089_v40, %v2104_v38 }
 0x338   : > { %5291 = vmatpush3.msra.mxu0 %v6053_v34  ;;  %5292 = vmatprep.mubr.msk.f32.mxu0 %vm5677_vm0, %v5676_v0 }
 0x339   : > { %5288 = vmatmul.mubr.msk.f32.vlgmr.msra.gmra.mxu1 %vm755_vm2, %v6063_v37  ;;  %5300 = vmatprep.subr.mxu0 %v5676_v0  ;;  %v2120_v54 = vrot.slane %v2112_v44, %v6020_v9  ;;  %v2127_v58 = vrot.slane %v2113_v53, %v6020_v9  ;;  %v2128_v59 = vcombine.low %v2096_v56, %v2111_v50 }
 0x33a   : > { %5296 = vmatpush3.msra.mxu1 %v6070_v39  ;;  %5297 = vmatprep.mubr.msk.f32.mxu1 %vm5677_vm0, %v5676_v0  ;;  %v2129_v63 = vcombine.high %v2096_v56, %v2111_v50 }
 0x33b   : > { %5293 = vmatmul.mubr.msk.f32.vlgmr.msra.gmra.mxu0 %vm755_vm2, %v6059_v36  ;;  %5305 = vmatprep.subr.mxu1 %v5676_v0  ;;  %v2144_v60 = vcombine.high %v2120_v54, %v5676_v0  ;;  %v2136_v1 = vrot.slane %v2128_v59, %v6020_v9  ;;  %v2145_v2 = vcombine.high %v2127_v58, %v5676_v0 }
 0x33c   : > { %5301 = vmatpush3.msra.mxu0 %v6084_v42  ;;  %5302 = vmatprep.mubr.msk.f32.mxu0 %vm5677_vm0, %v5676_v0  ;;  %v2143_v6 = vrot.slane %v2129_v63, %v6020_v9 }
 0x33d   : > { %5298 = vmatmul.mubr.msk.f32.vlgmr.msra.gmra.mxu1 %vm755_vm2, %v6093_v45  ;;  %5310 = vmatprep.subr.mxu0 %v5676_v0  ;;  %v2146_v7 = vcombine.high %v2136_v1, %v5676_v0 }
 0x33e   : > { %5306 = vmatpush3.msra.mxu1 %v6096_v46  ;;  %5307 = vmatprep.mubr.msk.f32.mxu1 %vm5677_vm0, %v5676_v0  ;;  %v2147_v10 = vcombine.high %v2143_v6, %v5676_v0 }
 0x33f   : > { %5303 = vmatmul.mubr.msk.f32.vlgmr.msra.gmra.mxu0 %vm755_vm2, %v6080_v41  ;;  %5315 = vmatprep.subr.mxu1 %v5676_v0 }
 0x340   : > { %5311 = vmatpush3.msra.mxu0 %v6111_v49  ;;  %5312 = vmatprep.mubr.msk.f32.mxu0 %vm5677_vm0, %v5676_v0 }
 0x341   : > { %5308 = vmatmul.mubr.msk.f32.vlgmr.msra.gmra.mxu1 %vm755_vm2, %v6108_v48  ;;  %5320 = vmatprep.subr.mxu0 %v5676_v0 }
 0x342   : > { %5316 = vmatpush3.msra.mxu1 %v6120_v55  ;;  %5317 = vmatprep.mubr.msk.f32.mxu1 %vm5677_vm0, %v5676_v0 }
 0x343   : > { %5313 = vmatmul.mubr.msk.f32.vlgmr.msra.gmra.mxu0 %vm755_vm2, %v2120_v54  ;;  %5325 = vmatprep.subr.mxu1 %v5676_v0 }
 0x344   : > { %5321 = vmatpush3.msra.mxu0 %v6132_v57  ;;  %5322 = vmatprep.mubr.msk.f32.mxu0 %vm5677_vm0, %v5676_v0 }
 0x345   : > { %5318 = vmatmul.mubr.msk.f32.vlgmr.msra.gmra.mxu1 %vm755_vm2, %v2144_v60  ;;  %5330 = vmatprep.subr.mxu0 %v5676_v0 }
 0x346   : > { %5326 = vmatpush3.msra.mxu1 %v6140_v61  ;;  %5327 = vmatprep.mubr.msk.f32.mxu1 %vm5677_vm0, %v5676_v0 }
 0x347   : > { %5323 = vmatmul.mubr.msk.f32.vlgmr.msra.gmra.mxu0 %vm755_vm2, %v2127_v58  ;;  %5335 = vmatprep.subr.mxu1 %v5676_v0 }
 0x348   : > { %5331 = vmatpush3.msra.mxu0 %v6150_v62  ;;  %5332 = vmatprep.mubr.msk.f32.mxu0 %vm5677_vm0, %v5676_v0 }
 0x349   : > { %5328 = vmatmul.mubr.msk.f32.vlgmr.msra.gmra.mxu1 %vm755_vm2, %v2145_v2  ;;  %5340 = vmatprep.subr.mxu0 %v5676_v0 }
 0x34a   : > { %5336 = vmatpush3.msra.mxu1 %v6158_v3  ;;  %5337 = vmatprep.mubr.msk.f32.mxu1 %vm5677_vm0, %v5676_v0 }
 0x34b   : > { %5333 = vmatmul.mubr.msk.f32.vlgmr.msra.gmra.mxu0 %vm755_vm2, %v2136_v1  ;;  %5345 = vmatprep.subr.mxu1 %v5676_v0 }
 0x34c   : > { %5341 = vmatpush3.msra.mxu0 %v6168_v4  ;;  %5342 = vmatprep.mubr.msk.f32.mxu0 %vm5677_vm0, %v5676_v0 }
 0x34d   : > { %5338 = vmatmul.mubr.msk.f32.vlgmr.msra.gmra.mxu1 %vm755_vm2, %v2146_v7  ;;  %5350 = vmatprep.subr.mxu0 %v5676_v0 }
 0x34e   : > { %5346 = vmatpush3.msra.mxu1 %v6176_v8  ;;  %5347 = vmatprep.mubr.msk.f32.mxu1 %vm5677_vm0, %v5676_v0 }
 0x34f   : > { %5343 = vmatmul.mubr.msk.f32.vlgmr.msra.gmra.mxu0 %vm755_vm2, %v2143_v6  ;;  %5355 = vmatprep.subr.mxu1 %v5676_v0 }
 0x350   : > { %5351 = vmatpush3.msra.mxu0 %v6009_v51  ;;  %5352 = vmatprep.mubr.msk.f32.mxu0 %vm5677_vm0, %v5676_v0 }
 0x351   : > { %5348 = vmatmul.mubr.msk.f32.vlgmr.msra.gmra.mxu1 %vm755_vm2, %v2147_v10  ;;  %5360 = vmatprep.subr.mxu0 %v5676_v0 }
 0x352   : > { %5356 = vmatpush3.msra.mxu1 %v6013_v52  ;;  %5357 = vmatprep.mubr.msk.f32.mxu1 %vm5677_vm0, %v5676_v0 }
 0x353   : > { %5353 = vmatmul.mubr.msk.f32.vlgmr.msra.gmra.mxu0 %vm755_vm2, %v2120_v54  ;;  %5365 = vmatprep.subr.mxu1 %v5676_v0 }
 0x354   : > { %5361 = vmatpush3.msra.mxu0 %v6032_v25  ;;  %5362 = vmatprep.mubr.msk.f32.mxu0 %vm5677_vm0, %v5676_v0 }
 0x355   : > { %5358 = vmatmul.mubr.msk.f32.vlgmr.msra.gmra.mxu1 %vm755_vm2, %v2144_v60  ;;  %5370 = vmatprep.subr.mxu0 %v5676_v0 }
 0x356   : > { %5366 = vmatpush3.msra.mxu1 %v6044_v30  ;;  %5367 = vmatprep.mubr.msk.f32.mxu1 %vm5677_vm0, %v5676_v0 }
 0x357   : > { %5363 = vmatmul.mubr.msk.f32.vlgmr.msra.gmra.mxu0 %vm755_vm2, %v2127_v58  ;;  %5375 = vmatprep.subr.mxu1 %v5676_v0 }
 0x358   : > { %5371 = vmatpush3.msra.mxu0 %v6053_v34  ;;  %5372 = vmatprep.mubr.msk.f32.mxu0 %vm5677_vm0, %v5676_v0 }
 0x359   : > { %5368 = vmatmul.mubr.msk.f32.vlgmr.msra.gmra.mxu1 %vm755_vm2, %v2145_v2  ;;  %5380 = vmatprep.subr.mxu0 %v5676_v0 }
 0x35a   : > { %5376 = vmatpush3.msra.mxu1 %v6070_v39  ;;  %5377 = vmatprep.mubr.msk.f32.mxu1 %vm5677_vm0, %v5676_v0 }
 0x35b   : > { %5373 = vmatmul.mubr.msk.f32.vlgmr.msra.gmra.mxu0 %vm755_vm2, %v2136_v1  ;;  %5385 = vmatprep.subr.mxu1 %v5676_v0 }
 0x35c   : > { %5381 = vmatpush3.msra.mxu0 %v6084_v42  ;;  %5382 = vmatprep.mubr.msk.f32.mxu0 %vm5677_vm0, %v5676_v0 }
 0x35d   : > { %5378 = vmatmul.mubr.msk.f32.vlgmr.msra.gmra.mxu1 %vm755_vm2, %v2146_v7  ;;  %5390 = vmatprep.subr.mxu0 %v5676_v0 }
 0x35e   : > { %5386 = vmatpush3.msra.mxu1 %v6096_v46  ;;  %5387 = vmatprep.mubr.msk.f32.mxu1 %vm5677_vm0, %v5676_v0 }
 0x35f   : > { %5383 = vmatmul.mubr.msk.f32.vlgmr.msra.gmra.mxu0 %vm755_vm2, %v2143_v6  ;;  %5395 = vmatprep.subr.mxu1 %v5676_v0 }
 0x360   : > { %5391 = vmatpush3.msra.mxu0 %v6111_v49  ;;  %5392 = vmatprep.mubr.msk.f32.mxu0 %vm5677_vm0, %v5676_v0 }
 0x361   : > { %5388 = vmatmul.mubr.msk.f32.vlgmr.msra.gmra.mxu1 %vm755_vm2, %v2147_v10  ;;  %5400 = vmatprep.subr.mxu0 %v5676_v0 }
 0x362   : > { %5396 = vmatpush3.msra.mxu1 %v6120_v55  ;;  %5397 = vmatprep.mubr.msk.f32.mxu1 %vm5677_vm0, %v5676_v0 }
 0x363   : > { %5393 = vmatmul.mubr.msk.f32.vlgmr.msra.gmra.mxu0 %vm755_vm2, %v6029_v24  ;;  %5405 = vmatprep.subr.mxu1 %v5676_v0 }
 0x364   : > { %5401 = vmatpush3.msra.mxu0 %v6132_v57  ;;  %5402 = vmatprep.mubr.msk.f32.mxu0 %vm5677_vm0, %v5676_v0 }
 0x365   : > { %5398 = vmatmul.mubr.msk.f32.vlgmr.msra.gmra.mxu1 %vm755_vm2, %v6039_v29  ;;  %5410 = vmatprep.subr.mxu0 %v5676_v0 }
 0x366   : > { %5406 = vmatpush3.msra.mxu1 %v6140_v61  ;;  %5407 = vmatprep.mubr.msk.f32.mxu1 %vm5677_vm0, %v5676_v0 }
 0x367   : > { %5403 = vmatmul.mubr.msk.f32.vlgmr.msra.gmra.mxu0 %vm755_vm2, %v6035_v27  ;;  %5415 = vmatprep.subr.mxu1 %v5676_v0 }
 0x368   : > { %5411 = vmatpush3.msra.mxu0 %v6150_v62  ;;  %5412 = vmatprep.mubr.msk.f32.mxu0 %vm5677_vm0, %v5676_v0 }
 0x369   : > { %5408 = vmatmul.mubr.msk.f32.vlgmr.msra.gmra.mxu1 %vm755_vm2, %v6063_v37  ;;  %5420 = vmatprep.subr.mxu0 %v5676_v0 }
 0x36a   : > { %5416 = vmatpush3.msra.mxu1 %v6158_v3  ;;  %5417 = vmatprep.mubr.msk.f32.mxu1 %vm5677_vm0, %v5676_v0 }
 0x36b   : > { %5413 = vmatmul.mubr.msk.f32.vlgmr.msra.gmra.mxu0 %vm755_vm2, %v6059_v36  ;;  %5425 = vmatprep.subr.mxu1 %v5676_v0 }
 0x36c   : > { %5421 = vmatpush3.msra.mxu0 %v6168_v4  ;;  %5422 = vmatprep.mubr.msk.f32.mxu0 %vm5677_vm0, %v5676_v0 }
 0x36d   : > { %5418 = vmatmul.mubr.msk.f32.vlgmr.msra.gmra.mxu1 %vm755_vm2, %v6093_v45 }
 0x36e   : > { %5426 = vmatpush3.msra.mxu1 %v6176_v8  ;;  %5427 = vmatprep.mubr.msk.f32.mxu1 %vm5677_vm0, %v5676_v0 }
 0x36f   : > { %5423 = vmatmul.mubr.msk.f32.vlgmr.msra.gmra.mxu0 %vm755_vm2, %v6080_v41 }
 0x371   : > { %5428 = vmatmul.mubr.msk.f32.vlgmr.msra.gmra.mxu1 %vm755_vm2, %v6108_v48 }
 0x3f3   : > { %v2233_v51 = vpop.f32.mrf.mxu0 }
 0x3f5   : > { %v5274_v52 = vpop.f32.mrf.mxu0  ;;  %v2306_v11 = vpop.f32.mrf.mxu1 }
 0x3f7   : > { %v5279_v12 = vpop.f32.mrf.mxu1  ;;  %v2379_v13 = vpop.f32.mrf.mxu0 }
 0x3f9   : > { %v5284_v14 = vpop.f32.mrf.mxu0  ;;  %v2452_v15 = vpop.f32.mrf.mxu1 }
 0x3fb   : > { %v5289_v16 = vpop.f32.mrf.mxu1  ;;  %v2525_v17 = vpop.f32.mrf.mxu0 }
 0x3fd   : > { %v5294_v18 = vpop.f32.mrf.mxu0  ;;  %v2598_v19 = vpop.f32.mrf.mxu1 }
 0x3ff   : > { %v5299_v20 = vpop.f32.mrf.mxu1  ;;  %v2671_v21 = vpop.f32.mrf.mxu0 }
 0x401   : > { %v5304_v22 = vpop.f32.mrf.mxu0  ;;  %v2744_v23 = vpop.f32.mrf.mxu1 }
 0x403   : > { %v5309_v24 = vpop.f32.mrf.mxu1  ;;  %v2817_v0 = vpop.f32.mrf.mxu0 }
 0x404   : > { %v3332_v38 = vsub.f32 %v2233_v51, %v2817_v0 }
 0x405   : > { %v5314_v25 = vpop.f32.mrf.mxu0  ;;  %v2890_v26 = vpop.f32.mrf.mxu1 }
 0x406   : > { %v3333_v34 = vsub.f32 %v2306_v11, %v2890_v26 }
 0x407   : > { %v5319_v27 = vpop.f32.mrf.mxu1  ;;  %v2963_v28 = vpop.f32.mrf.mxu0 }
 0x408   : > { %v3334_v35 = vsub.f32 %v2379_v13, %v2963_v28 }
 0x409   : > { %v5324_v29 = vpop.f32.mrf.mxu0  ;;  %v3036_v30 = vpop.f32.mrf.mxu1 }
 0x40a   : > { %v3335_v31 = vsub.f32 %v2452_v15, %v3036_v30  ;;  %v4460_v42 = vcombine.low %v3332_v38, %v3334_v35 }
 0x40b   : > { %v5329_v32 = vpop.f32.mrf.mxu1  ;;  %v3109_v33 = vpop.f32.mrf.mxu0 }
 0x40c   : > { %v4468_v39 = vcombine.low %v3333_v34, %v3335_v31  ;;  %v3336_v43 = vsub.f32 %v2525_v17, %v3109_v33  ;;  %v4467_v55 = vrot.slane %v4460_v42, %v6018_v5 }
 0x40d   : > { %v5334_v36 = vpop.f32.mrf.mxu0  ;;  %v3182_v37 = vpop.f32.mrf.mxu1 }
 0x40e   : > { %v4475_v47 = vrot.slane %v4468_v39, %v6018_v5  ;;  %v3337_v48 = vsub.f32 %v2598_v19, %v3182_v37 }
 0x40f   : > { %v5339_v40 = vpop.f32.mrf.mxu1  ;;  %v3255_v41 = vpop.f32.mrf.mxu0 }
 0x410   : > { %v3338_v44 = vsub.f32 %v2671_v21, %v3255_v41  ;;  %v4492_v59 = vcombine.low %v4467_v55, %v4475_v47 }
 0x411   : > { %v5344_v45 = vpop.f32.mrf.mxu0  ;;  %v3328_v46 = vpop.f32.mrf.mxu1 }
 0x412   : > { %v4476_v49 = vcombine.low %v3336_v43, %v3338_v44  ;;  %v3339_v50 = vsub.f32 %v2744_v23, %v3328_v46  ;;  %v6283_v4 = vrot.slane %v4492_v59, %v6020_v9 }
 0x413   : > { %v5349_v53 = vpop.f32.mrf.mxu1  ;;  %v3406_v54 = vpop.f32.mrf.mxu0 }
 0x414   : > { %v4484_v56 = vcombine.low %v3337_v48, %v3339_v50  ;;  %v4483_v60 = vrot.slane %v4476_v49, %v6018_v5 }
 0x415   : > { %v5354_v57 = vpop.f32.mrf.mxu0  ;;  %v3476_v58 = vpop.f32.mrf.mxu1 }
 0x416   : > { %v4491_v61 = vrot.slane %v4484_v56, %v6018_v5  ;;  %v4570_v56 = vld [vmem:[%s6372_s8] sm:$0xff] }
 0x417   : > { %v5359_v62 = vpop.f32.mrf.mxu1  ;;  %v3546_v63 = vpop.f32.mrf.mxu0  ;;  %v4684_v57 = vld [vmem:[%s6373_s9] sm:$0xff]  ;;  %5430 = vmatprep.subr.mxu0 %v4570_v56 }
 0x418   : > { %v4500_v1 = vcombine.low %v4483_v60, %v4491_v61  ;;  %5435 = vmatprep.subr.mxu1 %v4684_v57  ;;  %5431 = vmatpush3.msra.mxu0 %v4570_v56 }
 0x419   : > { %v5364_v2 = vpop.f32.mrf.mxu0  ;;  %v3616_v3 = vpop.f32.mrf.mxu1  ;;  %5436 = vmatpush3.msra.mxu1 %v4684_v57 }
 0x41a   : > { %v4507_v6 = vrot.slane %v4500_v1, %v6020_v9 }
 0x41b   : > { %v5369_v7 = vpop.f32.mrf.mxu1  ;;  %v3686_v8 = vpop.f32.mrf.mxu0 }
 0x41c   : > { %v4509_v10 = vcombine.high %v6283_v4, %v4507_v6  ;;  %v4508_v51 = vcombine.low %v6283_v4, %v4507_v6 }
 0x41d   : > { %v5374_v52 = vpop.f32.mrf.mxu0  ;;  %v3756_v11 = vpop.f32.mrf.mxu1 }
 0x41e   : > { %4511 = vrot.lane.b32.xlu0 %v4509_v10, %s5680_s24 }
 0x41f   : > { %v5379_v12 = vpop.f32.mrf.mxu1  ;;  %v3826_v13 = vpop.f32.mrf.mxu0 }
 0x421   : > { %v5384_v14 = vpop.f32.mrf.mxu0  ;;  %v3896_v15 = vpop.f32.mrf.mxu1 }
 0x423   : > { %v5389_v16 = vpop.f32.mrf.mxu1  ;;  %v3966_v17 = vpop.f32.mrf.mxu0 }
 0x424   : > { %v3967_v30 = vadd.f32 %v3966_v17, %v3406_v54 }
 0x425   : > { %v5394_v18 = vpop.f32.mrf.mxu0  ;;  %v4036_v19 = vpop.f32.mrf.mxu1 }
 0x426   : > { %v4037_v26 = vadd.f32 %v4036_v19, %v3476_v58 }
 0x427   : > { %v5399_v20 = vpop.f32.mrf.mxu1  ;;  %v4106_v21 = vpop.f32.mrf.mxu0 }
 0x428   : > { %v4107_v27 = vadd.f32 %v4106_v21, %v3546_v63 }
 0x429   : > { %v5404_v22 = vpop.f32.mrf.mxu0  ;;  %v4176_v23 = vpop.f32.mrf.mxu1 }
 0x42a   : > { %v4177_v24 = vadd.f32 %v4176_v23, %v3616_v3  ;;  %v4515_v34 = vcombine.low %v3967_v30, %v4107_v27 }
 0x42b   : > { %v5409_v0 = vpop.f32.mrf.mxu1  ;;  %v4246_v25 = vpop.f32.mrf.mxu0 }
 0x42c   : > { %v4523_v31 = vcombine.low %v4037_v26, %v4177_v24  ;;  %v4247_v35 = vadd.f32 %v4246_v25, %v3686_v8  ;;  %v4522_v44 = vrot.slane %v4515_v34, %v6018_v5 }
 0x42d   : > { %v5414_v28 = vpop.f32.mrf.mxu0  ;;  %v4316_v29 = vpop.f32.mrf.mxu1 }
 0x42e   : > { %v4530_v39 = vrot.slane %v4523_v31, %v6018_v5  ;;  %v4317_v40 = vadd.f32 %v4316_v29, %v3756_v11 }
 0x42f   : > { %v5419_v32 = vpop.f32.mrf.mxu1  ;;  %v4386_v33 = vpop.f32.mrf.mxu0 }
 0x430   : > { %v4387_v36 = vadd.f32 %v4386_v33, %v3826_v13  ;;  %v4547_v46 = vcombine.low %v4522_v44, %v4530_v39 }
 0x431   : > { %v5424_v37 = vpop.f32.mrf.mxu0  ;;  %v4456_v38 = vpop.f32.mrf.mxu1 }
 0x432   : > { %v4531_v41 = vcombine.low %v4247_v35, %v4387_v36  ;;  %v4457_v42 = vadd.f32 %v4456_v38, %v3896_v15  ;;  %v4554_v50 = vrot.slane %v4547_v46, %v6020_v9 }
 0x433   : > { %v5429_v43 = vpop.f32.mrf.mxu1 }
 0x434   : > { %v4539_v45 = vcombine.low %v4317_v40, %v4457_v42  ;;  %v4538_v47 = vrot.slane %v4531_v41, %v6018_v5 }
 0x436   : > { %v4546_v48 = vrot.slane %v4539_v45, %v6018_v5 }
 0x438   : > { %v4555_v49 = vcombine.low %v4538_v47, %v4546_v48 }
 0x43a   : > { %v4562_v53 = vrot.slane %v4555_v49, %v6020_v9 }
 0x43c   : > { %v4564_v54 = vcombine.high %v4554_v50, %v4562_v53  ;;  %v4563_v55 = vcombine.low %v4554_v50, %v4562_v53 }
 0x43e   : > { %4566 = vrot.lane.b32.xlu1 %v4564_v54, %s5680_s24 }
 0x490   : > { %v4512_v5 = vpop.permute.xlu0 %4511 }
 0x491   : > { %v4514_v9 = vsel %vm755_vm2, %v4508_v51, %v4512_v5 }
 0x492   : > { %4571 = vxpose.xlu1.b32.start.end [1/1] (short) (narrow) %v4514_v9, 16 }
 0x4b0   : > { %v4567_v58 = vpop.permute.xlu1 %4566 }
 0x4b1   : > { %v4569_v59 = vsel %vm755_vm2, %v4563_v55, %v4567_v58 }
 0x4b2   : > { %4685 = vxpose.xlu0.b32.start.end [1/1] (short) (narrow) %v4569_v59, 16 }
 0x50e   : > { %v4587_v60 = vpop.trf.xlu1 }
 0x50f   : > { %5432 = vmatprep.mubr.msk.f32.mxu0 %vm755_vm2, %v4587_v60 }
 0x512   : > { %v4588_v61 = vpop.trf.xlu1 }
 0x513   : > { %5433 = vmatmul.mubr.msk.f32.vlgmr.msra.gmra.mxu0 %vm755_vm2, %v4588_v61 }
 0x52e   : > { %v4701_v62 = vpop.trf.xlu0 }
 0x52f   : > { %5437 = vmatprep.mubr.msk.f32.mxu1 %vm755_vm2, %v4701_v62 }
 0x532   : > { %v4702_v63 = vpop.trf.xlu0 }
 0x533   : > { %5438 = vmatmul.mubr.msk.f32.vlgmr.msra.gmra.mxu1 %vm755_vm2, %v4702_v63 }
 0x5d3   : > { %v5434_v1 = vpop.f32.mrf.mxu0 }
 0x5d5   : > { %v4675_v4 = vpop.f32.mrf.mxu0 }
 0x5f3   : > { %v5439_v2 = vpop.f32.mrf.mxu1 }
 0x5f4   : > { %v4799_v3 = vsub.f32 %v5434_v1, %v5439_v2 }
 0x5f5   : > { %v4789_v6 = vpop.f32.mrf.mxu1 }
 0x5f6   : > { %4801 = vst [vmem:[%s483_s15 + $0x8] sm:$0xff] %v4799_v3  ;;  %v4798_v7 = vsub.f32 %v4675_v4, %v4789_v6 }
 0x5f8   : > { %4800 = vst [vmem:[%s483_s15] sm:$0xff] %v4798_v7 }
 0x5f9   : > { %5599 = shalt.err (!%p5596_p10)
}
 0x5fa   : > { %s5600_s26 = scalar_lea.hbm %s6315_s29, 256  ;;  %s5604_s22 = scalar_lea.hbm %s6400_s6, 512 }
 0x5fb   : > { %p5601_p1 = scmp.ne.s32.totalorder %s6315_s29, %s5600_s26  ;;  %p5605_p0 = scmp.lt.s32.totalorder %s6315_s29, %s6400_s6 }
 0x5fc   : > { %p5606_p8 = scmp.lt.s32.totalorder %s5604_s22, %s5600_s26 }
 0x5fd   : > { %p5602_p13 = pnand %p5601_p1, %p5790_p9 }
 0x5fe   : > { %p5607_p2 = por %p5606_p8, %p5605_p0 }
 0x5ff   : > { %p5603_p3 = pneg %p5602_p13 }
 0x601   : > { %p5608_p5 = pnand %p5607_p2, %p5603_p3 }
 0x603   : > { %5611 = shalt.err (!%p5608_p5)
}
 0x604   : > { %s5682_s27 = smov 128   ;;  %s5683_s20 = smov 256  }
 0x605   : > { %5444 = dma.vmem_to_hbm [thread:$0]  (%p5790_p9), %s6310_s19, 256, %s6315_s29, %s4803_s11, %s5682_s27, %s5683_s20, %s5680_s24  }
 0x606 PF: > { %s6401_s10 = sld [smem:[#allocation11_spill]]  ;;  %p5454_p6 = pnand %p4963_p12, %p5797_p11 }
 0x608   : > { %p5455_p4 = pneg %p5454_p6 }
 0x60c   : > { %s4833_s21 = sand.u32 1, %s6401_s10  }
 0x60d   : > { %s4834_s13 = scalar_lea.sflag [#allocation4], %s4833_s21 }
 0x60e   : > { %5645 = dma.done.wait (%p5455_p4), %s4834_s13, 256  }
 0x60f   : > { %5647 = vsyncadd (%p5455_p4), %s4834_s13, 4294967040  ;;  %s29_s18 = sadd.s32 1, %s5670_s18   ;;  %s6403_s12 = sld [smem:[#allocation12_spill]] }
 0x610   : > { %p26_p7 = scmp.ge.s32.totalorder %s29_s18, 4   ;;  %s6404_s15 = sld [smem:[#allocation15_spill]] }
 0x611   : > { %s6405_s28 = sld [smem:[#allocation13_spill]]  ;;  %s6406_s13 = smov %s5654_s14 }
 0x612   : > { %s6408_s16 = smov %s5666_s17 }
 0x613   :  { %28 = sbr.rel (!%p26_p7) target bundleno = 11 (0xb), region = 124 }
 0x615   : > { %s6407_s14 = smov %s6403_s12 }
 0x617   : > { %s6409_s17 = smov %s6405_s28 }
 0x618   :  { %4839 = vsyncpa [#allocation3], 1 }
 0x619   :  { %4841 = vsyncpa [#allocation3 + $0x1], 1 }
 0x61a   :  { %4842 = vsyncpa [#allocation6], 1 }
 0x61b   :  { %4844 = vsyncpa [#allocation6 + $0x1], 1 }
 0x61c   :  { %4845 = vsyncpa [#allocation4], 1 }
 0x61d   :  { %4847 = vsyncpa [#allocation4 + $0x1], 1 }

// kernel: tpu_custom_call.1
= control target key start
LH: loop header
LB: loop body
LE: loop exit
PB: predicated region body
PF: predicated region fallthrough
CT: control target
= control target key end

     0   :  { %s6364_s0 = inlined_call_operand.vmem [shape: bf16[2,16,16], index: 0, kind: input, shape index: {}]   ;;  %s6365_s1 = inlined_call_operand.vmem [shape: bf16[2,16,16], index: 1, kind: input, shape index: {}]   ;;  %s6366_s2 = inlined_call_operand.vmem [shape: bf16[16,8], index: 2, kind: input, shape index: {}]   ;;  %s6367_s3 = inlined_call_operand.vmem [shape: bf16[16,8], index: 3, kind: input, shape index: {}]   ;;  %s6368_s4 = inlined_call_operand.vmem [shape: bf16[16,8], index: 4, kind: input, shape index: {}]   ;;  %s6369_s5 = inlined_call_operand.vmem [shape: bf16[16,8], index: 5, kind: input, shape index: {}]   ;;  %s6370_s6 = inlined_call_operand.hbm [shape: f32[2,8,8,8], index: 6, kind: input, shape index: {}]   ;;  %s6371_s7 = inlined_call_operand.hbm [shape: f32[2,8,8,8], index: 7, kind: input, shape index: {}]   ;;  %s6372_s8 = inlined_call_operand.vmem [shape: f32[8,128], index: 8, kind: input, shape index: {}]   ;;  %s6373_s9 = inlined_call_operand.vmem [shape: f32[8,128], index: 9, kind: input, shape index: {}]   ;;  %s6374_s10 = inlined_call_operand.hbm [shape: f32[2,2,8,128], index: 10, kind: output, shape index: {}]  }
   0x1   :  { %6383 = sst [smem:[#allocation17_spill]] %s6370_s6 }
   0x2   :  { %6384 = sst [smem:[#allocation18_spill]] %s6374_s10 }
   0x3   :  { %15 = vsyncpa [#allocation3], 0 }
   0x4   :  { %17 = vsyncpa [#allocation3 + $0x1], 0 }
   0x5   :  { %18 = vsyncpa [#allocation6], 0 }
   0x6   :  { %20 = vsyncpa [#allocation6 + $0x1], 0 }
   0x7   :  { %21 = vsyncpa [#allocation4], 0 }
   0x8   :  { %23 = vsyncpa [#allocation4 + $0x1], 0  ;;  %s5739_s13 = smov 0   ;;  %s5741_s14 = smov 0  }
   0x9   :  { %s5743_s15 = smov 0   ;;  %s5745_s16 = smov 0  }
   0xa   :  { %s5747_s17 = smov 0   ;;  %s5749_s18 = smov 0  }
   0xb LB: > { %6385 = sst [smem:[#allocation11_spill]] %s5650_s13  ;;  %s4960_s19 = sadd.s32 4294967295, %s5670_s18   ;;  %s5670_s18 = sphi %s5749_s18, %s29_s18   ;;  %s5666_s17 = sphi %s5747_s17, %s6409_s17   ;;  %s5662_s16 = sphi %s5745_s16, %s6408_s16   ;;  %s5658_s15 = sphi %s5743_s15, %s6404_s15   ;;  %s5654_s14 = sphi %s5741_s14, %s6407_s14   ;;  %s5650_s13 = sphi %s5739_s13, %s6406_s13  }
   0xc   : > { %6386 = sst [smem:[#allocation12_spill]] %s5658_s15  ;;  %s4961_s20 = sadd.s32 4294967294, %s5670_s18  }
   0xd   : > { %s41_s21 = sadd.s32 1, %s5666_s17  ;;  %s188_s22 = sadd.s32 1, %s5658_s15 }
   0xe   : > { %p43_p0 = scmp.ge.s32.totalorder %s41_s21, 2  ;;  %p195_p1 = scmp.ne.s32.totalorder %s5658_s15, %s5654_s14 }
   0xf   : > { %p196_p2 = scmp.eq.s32.totalorder %s5670_s18, 0  ;;  %p201_p3 = scmp.ne.s32.totalorder %s5654_s14, %s5650_s13 }
  0x10   : > { %s6411_s21 = smov (%p43_p0, %s41_s21), 0  ;;  %p202_p5 = scmp.eq.s32.totalorder %s4960_s19, 0 }
  0x11   : > { %6387 = sst [smem:[#allocation13_spill]] %s6411_s21  ;;  %p5780_p4 = por %p196_p2, %p195_p1 }
  0x12   : > { %s185_s24 = ssub.s32 %s5666_s17, %s6411_s21  ;;  %p295_p6 = scmp.eq.s32.totalorder %s4960_s19, 1 }
  0x13   : > { %p186_p7 = scmp.eq.s32.totalorder %s185_s24, 0  ;;  %p5786_p8 = por %p202_p5, %p201_p3 }
  0x14   : > { %p5790_p9 = por %p295_p6, %p195_p1  ;;  %p301_p10 = scmp.eq.s32.totalorder %s4961_s20, 1 }
  0x15   : > { %s5795_s27 = scalar_select %p186_p7, %s5658_s15, %s188_s22  }
  0x16   : > { %s6390_s26 = scalar_select %p5790_p9, 1, 0 }
  0x17   : > { %6392 = sst [smem:[#allocation15_spill]] %s5795_s27  ;;  %p5797_p11 = por %p301_p10, %p201_p3 }
  0x18   : > { %6391 = sst [smem:[#allocation14_spill]] %s6390_s26  ;;  %p4963_p12 = scmp.ge.s32.totalorder %s5670_s18, 2 }
  0x19   : > { %s6393_s28 = scalar_select %p5797_p11, 1, 0 }
  0x1a   : > { %p5457_p13 = scmp.lt.s32.totalorder %s5670_s18, 2  ;;  %s5804_s29 = sand.u32 1, %s5658_s15  }
  0x1b   : > { %6394 = sst [smem:[#allocation16_spill]] %s6393_s28  ;;  %s6377_s30 = sshll.u32 %s5804_s29, 6 }
  0x1c   : > { %s5052_s11 = sshll.u32 %s5666_s17, 10  ;;  %s6395_s6 = sld [smem:[#allocation17_spill]] }
  0x1d   : > { %s369_s22 = scalar_lea.vmem [#allocation2], %s6377_s30  ;;  %p5817_p0 = pnand %p5457_p13, %p5780_p4 }
  0x1e   : > { %s376_s24 = sshll.u32 %s369_s22, 4  ;;  %p4970_p1 = scmp.ge.s32.totalorder %s5670_s18, 1  ;;  %s377_s24 = int_to_ptr.vmem [resolvable:$true] %s376_s24 }
  0x1f   : > { %s366_s27 = scalar_lea.sflag [#allocation3], %s5804_s29  ;;  %p5532_p2 = pneg %p5817_p0 }
  0x20   : > { %s5543_s15 = scalar_lea.vmem %s377_s24, 1024  ;;  %s5672_s12 = smov [#allocation2]  }
  0x21   : > { %p5544_p3 = scmp.ne.s32.totalorder %s377_s24, %s5543_s15  ;;  %s5548_s19 = sshll.u32 %s5672_s12, 4  ;;  %s5549_s19 = int_to_ptr.vmem [resolvable:$false] %s5548_s19 }
  0x22   : > { %s375_s20 = scalar_lea.hbm %s6395_s6, %s5052_s11  ;;  %s5550_s23 = scalar_lea.vmem %s5549_s19, 2048 }
  0x23   : > { %p5546_p5 = pnand %p5544_p3, %p5532_p2  ;;  %p5551_p4 = scmp.lt.s32.totalorder %s377_s24, %s5549_s19 }
  0x24   : > { %p5552_p7 = scmp.lt.s32.totalorder %s5550_s23, %s5543_s15 }
  0x25   : > { %p5547_p6 = pneg %p5546_p5 }
  0x26   : > { %p5553_p10 = por %p5552_p7, %p5551_p4 }
  0x28   : > { %p5554_p13 = pnand %p5553_p10, %p5547_p6 }
  0x2a   : > { %5557 = shalt.err (!%p5554_p13)
}
  0x2b   : > { %s5673_s22 = smov 128   ;;  %s5674_s30 = smov 8  }
  0x2c   : > { %5449 = dma.hbm_to_vmem [thread:$0]  (!%p5817_p0), %s375_s20, 1024, %s377_s24, %s366_s27, %s5673_s22, %s5673_s22, %s5674_s30  }
  0x2d   : > { %p405_p3 = scmp.lt.s32.totalorder %s5670_s18, 3  ;;  %s396_s15 = scalar_lea.hbm %s6371_s7, %s5052_s11 }
  0x2e   : > { %s6398_s23 = sshll.u32 %s5804_s29, 6  ;;  %s387_s10 = scalar_lea.sflag [#allocation6], %s5804_s29 }
  0x2f   : > { %p5838_p5 = pnand %p4970_p1, %p405_p3  ;;  %s390_s28 = scalar_lea.vmem [#allocation5], %s6398_s23 }
  0x30   : > { %s397_s13 = sshll.u32 %s390_s28, 4  ;;  %s5675_s27 = smov [#allocation5]   ;;  %s398_s13 = int_to_ptr.vmem [resolvable:$true] %s397_s13 }
  0x31   : > { %s5571_s26 = scalar_lea.vmem %s398_s13, 1024  ;;  %s5576_s20 = sshll.u32 %s5675_s27, 4  ;;  %s5577_s20 = int_to_ptr.vmem [resolvable:$false] %s5576_s20 }
  0x32   : > { %p5572_p6 = scmp.ne.s32.totalorder %s398_s13, %s5571_s26  ;;  %s5578_s6 = scalar_lea.vmem %s5577_s20, 2048 }
  0x33   : > { %p5579_p10 = scmp.lt.s32.totalorder %s398_s13, %s5577_s20  ;;  %p5580_p1 = scmp.lt.s32.totalorder %s5578_s6, %s5571_s26 }
  0x34   : > { %p5574_p4 = pnand %p5572_p6, %p5532_p2 }
  0x35   : > { %p5581_p13 = por %p5580_p1, %p5579_p10 }
  0x36   : > { %p5575_p7 = pneg %p5574_p4 }
  0x38   : > { %p5582_p3 = pnand %p5581_p13, %p5575_p7 }
  0x3a   : > { %5585 = shalt.err (!%p5582_p3)
}
  0x3b   : > { %5452 = dma.hbm_to_vmem [thread:$0]  (!%p5817_p0), %s396_s15, 1024, %s398_s13, %s387_s10, %s5673_s22, %s5673_s22, %s5674_s30  }
  0x3c   : > { %409 = sbr.rel (%p5838_p5) target bundleno = 1542 (0x606), region = 60  ;;  %s5853_s28 = sand.u32 (!%p5838_p5), 1, %s5654_s14  }
  0x3d   : > { %s4971_s29 = sshll.u32 (!%p5838_p5), %s5853_s28, 6  ;;  %s412_s11 = scalar_lea.sflag (!%p5838_p5), [#allocation3], %s5853_s28 }
  0x3e   : > { %s5857_s24 = scalar_lea.vmem (!%p5838_p5), [#allocation2], %s4971_s29 }
  0x41   : > { %5637 = dma.done.wait (%p5786_p8), %s412_s11, 1024  }
  0x42   : > { %5639 = vsyncadd (%p5786_p8), %s412_s11, 4294966272  ;;  %s421_s10 = scalar_lea.sflag [#allocation6], %s5853_s28  ;;  %s5864_s13 = scalar_lea.vmem [#allocation5], %s4971_s29 }
  0x43   : > { %5641 = dma.done.wait (%p5786_p8), %s421_s10, 1024  }
  0x44   : > { %5643 = vsyncadd (%p5786_p8), %s421_s10, 4294966272  ;;  %p485_p0 = scmp.lt.s32.totalorder %s5662_s16, 1  ;;  %v5676_v0 = vmov 0.0   ;;  %vm5677_vm0 = vmmov 0   ;;  %v5516_v1 = vld [vmem:[%s6366_s2] sm:$0xff]   ;;  %vm523_vm1 = vcmask 130048   ;;  %v2020_v57 = vlaneseq }
  0x45   : > { %5166 = vmatprep.subr.bf16.mxu0 %v5676_v0  ;;  %5172 = vmatprep.subr.bf16.mxu1 %v5676_v0  ;;  %v5517_v2 = vld [vmem:[%s6367_s3] sm:$0xff]   ;;  %vm755_vm2 = vcmask 64512   ;;  %v6013_v52 = vld [vmem:[%s5857_s24 + $0x8] sm:$0xff]  ;;  %v5678_v55 = vmov 1983009808   ;;  %s4973_s22 = sshll.u32 %s5853_s28, 4 }
  0x46   : > { %5168 = vmatprep.mubr.msk.bf16.mxu0 %vm5677_vm0, %v5676_v0  ;;  %5174 = vmatprep.mubr.msk.bf16.mxu1 %vm5677_vm0, %v5676_v0  ;;  %s486_s21 = scalar_select %p485_p0, %s5662_s16, 1  ;;  %v5519_v4 = vld [vmem:[%s6368_s4] sm:$0xff]   ;;  %v2018_v56 = vunpack.c.l.s4 %v5678_v55  ;;  %v5679_v60 = vmov 1934713408   ;;  %v2021_v63 = vshrl.u32 %v2020_v57, 7  ;;  %v6120_v55 = vld [vmem:[%s5864_s13 + $0x8] sm:$0xff] }
  0x47   : > { %5167 = vmatpush3.bf16.msra.mxu0 %v5516_v1  ;;  %5173 = vmatpush3.bf16.msra.mxu1 %v5517_v2  ;;  %v5521_v5 = vld [vmem:[%s6369_s5] sm:$0xff]   ;;  %v2049_v61 = vunpack.c.l.s4 %v5679_v60  ;;  %v6132_v57 = vld [vmem:[%s5864_s13 + $0x10] sm:$0xff]  ;;  %s5049_s23 = sshll.u32 %s5662_s16, 7  ;;  %s4803_s11 = scalar_lea.sflag [#allocation4], %s5853_s28 }
  0x48   : > { %s5054_s26 = sshll.u32 %s486_s21, 3  ;;  %5178 = vmatprep.subr.bf16.mxu0 %v5676_v0  ;;  %5184 = vmatprep.subr.bf16.mxu1 %v5676_v0  ;;  %v6009_v51 = vld [vmem:[%s5857_s24] sm:$0xff]  ;;  %v2019_v62 = vunpack.c.0.s8 %v2018_v56  ;;  %s5681_s16 = smov [#allocation7]  }
  0x49   : > { %s492_s15 = scalar_lea.vmem %s6364_s0, %s5054_s26  ;;  %s502_s6 = scalar_lea.vmem %s6365_s1, %s5054_s26 }
  0x4a   : > { %v5518_v3 = vld [vmem:[%s492_s15] sm:$0xff]   ;;  %s483_s15 = scalar_lea.vmem [#allocation7], %s4973_s22  ;;  %s5590_s21 = sshll.u32 %s5681_s16, 4  ;;  %s5591_s21 = int_to_ptr.vmem [resolvable:$false] %s5590_s21 }
  0x4b   : > { %5169 = vmatmul.mubr.msk.bf16.vlgmr.msra.gmra.mxu0 %vm523_vm1, %v5518_v3  ;;  %5175 = vmatmul.mubr.msk.bf16.vlgmr.msra.gmra.mxu1 %vm523_vm1, %v5518_v3  ;;  %v5520_v6 = vld [vmem:[%s502_s6] sm:$0xff]   ;;  %v2050_v3 = vunpack.c.0.s8 %v2049_v61  ;;  %v6140_v61 = vld [vmem:[%s5864_s13 + $0x18] sm:$0xff]  ;;  %s4818_s19 = sshll.u32 %s483_s15, 4  ;;  %s6400_s6 = sld [smem:[#allocation18_spill]]  ;;  %s6310_s19 = int_to_ptr.vmem [resolvable:$true] %s4818_s19 }
  0x4c   : > { %5179 = vmatpush3.bf16.msra.mxu0 %v5519_v4  ;;  %5180 = vmatprep.mubr.msk.bf16.mxu0 %vm5677_vm0, %v5676_v0  ;;  %s5586_s10 = scalar_lea.vmem %s6310_s19, 256  ;;  %p5593_p6 = scmp.lt.s32.totalorder %s6310_s19, %s5591_s21 }
  0x4d   : > { %5185 = vmatpush3.bf16.msra.mxu1 %v5521_v5  ;;  %5186 = vmatprep.mubr.msk.bf16.mxu1 %vm5677_vm0, %v5676_v0  ;;  %v6018_v5 = vsub.s32 %v2019_v62, %v2021_v63  ;;  %v6150_v62 = vld [vmem:[%s5864_s13 + $0x20] sm:$0xff]  ;;  %p5587_p8 = scmp.ne.s32.totalorder %s6310_s19, %s5586_s10 }
  0x4e   : > { %5190 = vmatprep.subr.mxu0 %v5676_v0  ;;  %5195 = vmatprep.subr.mxu1 %v5676_v0 }
  0x4f   : > { %p5588_p2 = pnand %p5587_p8, %p5790_p9 }
  0x51   : > { %s6315_s29 = scalar_lea.hbm %s6400_s6, %s5049_s23  ;;  %p5589_p5 = pneg %p5588_p2 }
  0x53   : > { %5181 = vmatmul.mubr.msk.bf16.vlgmr.msra.gmra.mxu0 %vm523_vm1, %v5520_v6  ;;  %5187 = vmatmul.mubr.msk.bf16.vlgmr.msra.gmra.mxu1 %vm523_vm1, %v5520_v6 }
  0x54   : > { %5192 = vmatprep.mubr.msk.f32.mxu0 %vm5677_vm0, %v5676_v0  ;;  %5197 = vmatprep.mubr.msk.f32.mxu1 %vm5677_vm0, %v5676_v0 }
 0x10b   : > { %v561_v7 = vpop.f32.mrf.mxu0  ;;  %v610_v8 = vpop.f32.mrf.mxu1 }
 0x10c   : > { %723 = vxpose.xlu0.b32.start.end [1/1] (short) (narrow) %v561_v7, 8  ;;  %934 = vxpose.xlu1.b32.start.end [1/1] (short) (narrow) %v610_v8, 8 }
 0x10d   : > { %v5170_v9 = vpop.f32.mrf.mxu0  ;;  %v5176_v10 = vpop.f32.mrf.mxu1 }
 0x10e   : > { %v6020_v9 = vsub.s32 %v2050_v3, %v2021_v63  ;;  %v6158_v3 = vld [vmem:[%s5864_s13 + $0x28] sm:$0xff] }
 0x10f   : > { %v564_v11 = vpop.f32.mrf.mxu0  ;;  %v613_v12 = vpop.f32.mrf.mxu1 }
 0x110   : > { %829 = vxpose.xlu0.b32.start.end [1/1] (short) (narrow) %v564_v11, 8  ;;  %1039 = vxpose.xlu1.b32.start.end [1/1] (short) (narrow) %v613_v12, 8 }
 0x111   : > { %v5171_v13 = vpop.f32.mrf.mxu0  ;;  %v5177_v14 = vpop.f32.mrf.mxu1 }
 0x113   : > { %v5912_v15 = vpop.f32.mrf.mxu0  ;;  %v5915_v16 = vpop.f32.mrf.mxu1 }
 0x114   : > { %5191 = vmatpush3.msra.mxu0 %v5912_v15 }
 0x115   : > { %v5182_v17 = vpop.f32.mrf.mxu0  ;;  %5200 = vmatprep.subr.mxu0 %v5676_v0  ;;  %v5188_v18 = vpop.f32.mrf.mxu1 }
 0x117   : > { %v5918_v19 = vpop.f32.mrf.mxu0  ;;  %v5921_v20 = vpop.f32.mrf.mxu1 }
 0x118   : > { %5196 = vmatpush3.msra.mxu1 %v5918_v19 }
 0x119   : > { %v5183_v21 = vpop.f32.mrf.mxu0  ;;  %5205 = vmatprep.subr.mxu1 %v5676_v0  ;;  %v5189_v22 = vpop.f32.mrf.mxu1 }
 0x188   : > { %v739_v23 = vpop.trf.xlu0  ;;  %v950_v24 = vpop.trf.xlu1 }
 0x189   : > { %5193 = vmatmul.mubr.msk.f32.vlgmr.msra.gmra.mxu0 %vm755_vm2, %v739_v23 }
 0x18a   : > { %5201 = vmatpush3.msra.mxu0 %v5915_v16  ;;  %5202 = vmatprep.mubr.msk.f32.mxu0 %vm5677_vm0, %v5676_v0 }
 0x18b   : > { %5210 = vmatprep.subr.mxu0 %v5676_v0 }
 0x18c   : > { %v845_v25 = vpop.trf.xlu0  ;;  %v1055_v26 = vpop.trf.xlu1 }
 0x18d   : > { %5198 = vmatmul.mubr.msk.f32.vlgmr.msra.gmra.mxu1 %vm755_vm2, %v845_v25  ;;  %5203 = vmatmul.mubr.msk.f32.vlgmr.msra.gmra.mxu0 %vm755_vm2, %v950_v24 }
 0x18e   : > { %5206 = vmatpush3.msra.mxu1 %v5921_v20  ;;  %5211 = vmatpush3.msra.mxu0 %v5912_v15 }
 0x18f   : > { %5207 = vmatprep.mubr.msk.f32.mxu1 %vm5677_vm0, %v5676_v0  ;;  %5212 = vmatprep.mubr.msk.f32.mxu0 %vm5677_vm0, %v5676_v0 }
 0x190   : > { %5215 = vmatprep.subr.mxu1 %v5676_v0  ;;  %5220 = vmatprep.subr.mxu0 %v5676_v0 }
 0x191   : > { %5208 = vmatmul.mubr.msk.f32.vlgmr.msra.gmra.mxu1 %vm755_vm2, %v1055_v26  ;;  %5213 = vmatmul.mubr.msk.f32.vlgmr.msra.gmra.mxu0 %vm755_vm2, %v950_v24 }
 0x192   : > { %5216 = vmatpush3.msra.mxu1 %v5918_v19  ;;  %5221 = vmatpush3.msra.mxu0 %v5915_v16 }
 0x193   : > { %5217 = vmatprep.mubr.msk.f32.mxu1 %vm5677_vm0, %v5676_v0  ;;  %5222 = vmatprep.mubr.msk.f32.mxu0 %vm5677_vm0, %v5676_v0 }
 0x194   : > { %5225 = vmatprep.subr.mxu1 %v5676_v0  ;;  %5230 = vmatprep.subr.mxu0 %v5676_v0 }
 0x195   : > { %5218 = vmatmul.mubr.msk.f32.vlgmr.msra.gmra.mxu1 %vm755_vm2, %v1055_v26  ;;  %5223 = vmatmul.mubr.msk.f32.vlgmr.msra.gmra.mxu0 %vm755_vm2, %v739_v23 }
 0x196   : > { %5226 = vmatpush3.msra.mxu1 %v5921_v20  ;;  %5231 = vmatpush3.xpose.msk.msra.mxu0 %vm755_vm2, %v5912_v15 }
 0x197   : > { %5227 = vmatprep.mubr.msk.f32.mxu1 %vm5677_vm0, %v5676_v0  ;;  %5235 = vmatprep.subr.mxu1 %v5676_v0 }
 0x198   : > { %5232 = vmatprep.mubr.msk.f32.mxu0 %vm5677_vm0, %v5676_v0  ;;  %5240 = vmatprep.subr.mxu0 %v5676_v0 }
 0x199   : > { %5228 = vmatmul.mubr.msk.f32.vlgmr.msra.gmra.mxu1 %vm755_vm2, %v845_v25  ;;  %v6032_v25 = vld [vmem:[%s5857_s24 + $0x10] sm:$0xff] }
 0x19a   : > { %5236 = vmatpush3.xpose.msk.msra.mxu1 %vm755_vm2, %v5918_v19  ;;  %5237 = vmatprep.mubr.msk.f32.mxu1 %vm5677_vm0, %v5676_v0 }
 0x19b   : > { %5245 = vmatprep.subr.mxu1 %v5676_v0 }
 0x249   : > { %v825_v27 = vpop.f32.mrf.mxu0 }
 0x24b   : > { %v5194_v28 = vpop.f32.mrf.mxu0 }
 0x24d   : > { %v930_v29 = vpop.f32.mrf.mxu1  ;;  %v1035_v30 = vpop.f32.mrf.mxu0 }
 0x24e   : > { %v1144_v31 = vsub.f32 %v825_v27, %v1035_v30  ;;  %v6044_v30 = vld [vmem:[%s5857_s24 + $0x18] sm:$0xff] }
 0x24f   : > { %v5199_v32 = vpop.f32.mrf.mxu1  ;;  %v5204_v33 = vpop.f32.mrf.mxu0 }
 0x250   : > { %5522 = vtanh.f32 %v1144_v31 }
 0x251   : > { %v1140_v34 = vpop.f32.mrf.mxu1  ;;  %v1214_v35 = vpop.f32.mrf.mxu0 }
 0x252   : > { %v1145_v36 = vsub.f32 %v930_v29, %v1140_v34  ;;  %v6053_v34 = vld [vmem:[%s5857_s24 + $0x20] sm:$0xff] }
 0x253   : > { %v5209_v37 = vpop.f32.mrf.mxu1  ;;  %v5214_v38 = vpop.f32.mrf.mxu0 }
 0x254   : > { %5524 = vtanh.f32 %v1145_v36 }
 0x255   : > { %v1284_v39 = vpop.f32.mrf.mxu1  ;;  %v1354_v40 = vpop.f32.mrf.mxu0 }
 0x256   : > { %v1355_v41 = vadd.f32 %v1354_v40, %v1214_v35 }
 0x257   : > { %v5219_v42 = vpop.f32.mrf.mxu1  ;;  %v5224_v43 = vpop.f32.mrf.mxu0 }
 0x258   : > { %5526 = vtanh.f32 %v1355_v41  ;;  %v6084_v42 = vld [vmem:[%s5857_s24 + $0x30] sm:$0xff] }
 0x259   : > { %v1424_v44 = vpop.f32.mrf.mxu1 }
 0x25a   : > { %v1425_v45 = vadd.f32 %v1424_v44, %v1284_v39  ;;  %v6070_v39 = vld [vmem:[%s5857_s24 + $0x28] sm:$0xff] }
 0x25b   : > { %v5229_v46 = vpop.f32.mrf.mxu1 }
 0x25c   : > { %5528 = vtanh.f32 %v1425_v45  ;;  %v6096_v46 = vld [vmem:[%s5857_s24 + $0x38] sm:$0xff]  ;;  %s5680_s24 = smov 8  }
 0x25d   : > { %v5523_v47 = vpop.eup %5522 }
 0x25e   : > { %5233 = vmatmul.mubr.msk.f32.vlgmr.msra.gmra.mxu0 %vm755_vm2, %v5523_v47 }
 0x25f   : > { %5241 = vmatpush3.xpose.msk.msra.mxu0 %vm755_vm2, %v5915_v16  ;;  %5242 = vmatprep.mubr.msk.f32.mxu0 %vm5677_vm0, %v5676_v0 }
 0x260   : > { %5250 = vmatprep.subr.mxu0 %v5676_v0 }
 0x261   : > { %v5525_v48 = vpop.eup %5524 }
 0x262   : > { %5238 = vmatmul.mubr.msk.f32.vlgmr.msra.gmra.mxu1 %vm755_vm2, %v5525_v48 }
 0x263   : > { %5246 = vmatpush3.xpose.msk.msra.mxu1 %vm755_vm2, %v5921_v20  ;;  %5247 = vmatprep.mubr.msk.f32.mxu1 %vm5677_vm0, %v5676_v0 }
 0x264   : > { %5255 = vmatprep.subr.mxu1 %v5676_v0 }
 0x265   : > { %v5527_v49 = vpop.eup %5526 }
 0x266   : > { %5243 = vmatmul.mubr.msk.f32.vlgmr.msra.gmra.mxu0 %vm755_vm2, %v5527_v49 }
 0x267   : > { %5251 = vmatpush3.xpose.msk.msra.mxu0 %vm755_vm2, %v5912_v15  ;;  %5252 = vmatprep.mubr.msk.f32.mxu0 %vm5677_vm0, %v5676_v0 }
 0x268   : > { %5260 = vmatprep.subr.mxu0 %v5676_v0 }
 0x269   : > { %v5529_v50 = vpop.eup %5528 }
 0x26a   : > { %5248 = vmatmul.mubr.msk.f32.vlgmr.msra.gmra.mxu1 %vm755_vm2, %v5529_v50  ;;  %5253 = vmatmul.mubr.msk.f32.vlgmr.msra.gmra.mxu0 %vm755_vm2, %v5527_v49  ;;  %v6111_v49 = vld [vmem:[%s5864_s13] sm:$0xff] }
 0x26b   : > { %5256 = vmatpush3.xpose.msk.msra.mxu1 %vm755_vm2, %v5918_v19  ;;  %5261 = vmatpush3.xpose.msk.msra.mxu0 %vm755_vm2, %v5915_v16 }
 0x26c   : > { %5257 = vmatprep.mubr.msk.f32.mxu1 %vm5677_vm0, %v5676_v0  ;;  %5262 = vmatprep.mubr.msk.f32.mxu0 %vm5677_vm0, %v5676_v0 }
 0x26d   : > { %5265 = vmatprep.subr.mxu1 %v5676_v0  ;;  %5270 = vmatprep.subr.mxu0 %v5676_v0 }
 0x26e   : > { %5258 = vmatmul.mubr.msk.f32.vlgmr.msra.gmra.mxu1 %vm755_vm2, %v5529_v50  ;;  %5263 = vmatmul.mubr.msk.f32.vlgmr.msra.gmra.mxu0 %vm755_vm2, %v5523_v47 }
 0x26f   : > { %5266 = vmatpush3.xpose.msk.msra.mxu1 %vm755_vm2, %v5921_v20  ;;  %5267 = vmatprep.mubr.msk.f32.mxu1 %vm5677_vm0, %v5676_v0 }
 0x270   : > { %5275 = vmatprep.subr.mxu1 %v5676_v0  ;;  %5272 = vmatprep.mubr.msk.f32.mxu0 %vm5677_vm0, %v5676_v0 }
 0x271   : > { %5271 = vmatpush3.msra.mxu0 %v6009_v51 }
 0x272   : > { %5268 = vmatmul.mubr.msk.f32.vlgmr.msra.gmra.mxu1 %vm755_vm2, %v5525_v48  ;;  %5280 = vmatprep.subr.mxu0 %v5676_v0 }
 0x273   : > { %5277 = vmatprep.mubr.msk.f32.mxu1 %vm5677_vm0, %v5676_v0  ;;  %5276 = vmatpush3.msra.mxu1 %v6013_v52 }
 0x274   : > { %5285 = vmatprep.subr.mxu1 %v5676_v0 }
 0x31e   : > { %v1502_v53 = vpop.f32.mrf.mxu0 }
 0x320   : > { %v5234_v54 = vpop.f32.mrf.mxu0 }
 0x322   : > { %v1578_v58 = vpop.f32.mrf.mxu1 }
 0x324   : > { %v5239_v59 = vpop.f32.mrf.mxu1 }
 0x326   : > { %v1654_v1 = vpop.f32.mrf.mxu0 }
 0x327   : > { %v1734_v4 = vsub.f32 %v1502_v53, %v1654_v1 }
 0x328   : > { %v5244_v2 = vpop.f32.mrf.mxu0 }
 0x329   : > { %v2016_v12 = vcombine.high %v1734_v4, %v5676_v0  ;;  %v2023_v13 = vrot.slane %v1734_v4, %v6018_v5  ;;  %v6168_v4 = vld [vmem:[%s5864_s13 + $0x30] sm:$0xff] }
 0x32a   : > { %v1730_v6 = vpop.f32.mrf.mxu1  ;;  %v1802_v7 = vpop.f32.mrf.mxu0 }
 0x32b   : > { %v1735_v8 = vsub.f32 %v1578_v58, %v1730_v6  ;;  %v2030_v23 = vrot.slane %v2016_v12, %v6018_v5 }
 0x32c   : > { %v5249_v10 = vpop.f32.mrf.mxu1  ;;  %v5254_v11 = vpop.f32.mrf.mxu0 }
 0x32d   : > { %v2031_v14 = vcombine.high %v1735_v8, %v5676_v0  ;;  %v2038_v15 = vrot.slane %v1735_v8, %v6018_v5  ;;  %v6176_v8 = vld [vmem:[%s5864_s13 + $0x38] sm:$0xff]  ;;  %s5592_s13 = scalar_lea.vmem %s5591_s21, 512 }
 0x32e   : > { %v1872_v16 = vpop.f32.mrf.mxu1  ;;  %v1942_v17 = vpop.f32.mrf.mxu0  ;;  %p5594_p4 = scmp.lt.s32.totalorder %s5592_s13, %s5586_s10 }
 0x32f   : > { %v2045_v18 = vrot.slane %v2031_v14, %v6018_v5  ;;  %v2046_v19 = vcombine.low %v2023_v13, %v2038_v15  ;;  %v2047_v20 = vcombine.high %v2023_v13, %v2038_v15  ;;  %v1943_v33 = vadd.f32 %v1942_v17, %v1802_v7 }
 0x330   : > { %v5259_v21 = vpop.f32.mrf.mxu1  ;;  %v5264_v22 = vpop.f32.mrf.mxu0  ;;  %p5595_p7 = por %p5594_p4, %p5593_p6 }
 0x331   : > { %v6029_v24 = vrot.slane %v2046_v19, %v6020_v9  ;;  %v6035_v27 = vrot.slane %v2047_v20, %v6020_v9  ;;  %v2062_v28 = vcombine.low %v2030_v23, %v2045_v18  ;;  %v2063_v35 = vcombine.high %v2030_v23, %v2045_v18 }
 0x332   : > { %v2012_v26 = vpop.f32.mrf.mxu1  ;;  %v2089_v40 = vrot.slane %v1943_v33, %v6018_v5  ;;  %v2082_v47 = vcombine.high %v1943_v33, %v5676_v0  ;;  %p5596_p10 = pnand %p5595_p7, %p5589_p5 }
 0x333   : > { %v6039_v29 = vcombine.high %v6029_v24, %v5676_v0  ;;  %5273 = vmatmul.mubr.msk.f32.vlgmr.msra.gmra.mxu0 %vm755_vm2, %v6029_v24  ;;  %v2013_v31 = vadd.f32 %v2012_v26, %v1872_v16  ;;  %v6059_v36 = vrot.slane %v2062_v28, %v6020_v9  ;;  %v6063_v37 = vcombine.high %v6035_v27, %v5676_v0 }
 0x334   : > { %v5269_v32 = vpop.f32.mrf.mxu1  ;;  %5281 = vmatpush3.msra.mxu0 %v6032_v25  ;;  %5282 = vmatprep.mubr.msk.f32.mxu0 %vm5677_vm0, %v5676_v0  ;;  %v6080_v41 = vrot.slane %v2063_v35, %v6020_v9  ;;  %v2096_v56 = vrot.slane %v2082_v47, %v6018_v5 }
 0x335   : > { %5278 = vmatmul.mubr.msk.f32.vlgmr.msra.gmra.mxu1 %vm755_vm2, %v6039_v29  ;;  %5290 = vmatprep.subr.mxu0 %v5676_v0  ;;  %v2104_v38 = vrot.slane %v2013_v31, %v6018_v5  ;;  %v2097_v43 = vcombine.high %v2013_v31, %v5676_v0  ;;  %v6093_v45 = vcombine.high %v6059_v36, %v5676_v0 }
 0x336   : > { %5286 = vmatpush3.msra.mxu1 %v6044_v30  ;;  %5287 = vmatprep.mubr.msk.f32.mxu1 %vm5677_vm0, %v5676_v0  ;;  %v6108_v48 = vcombine.high %v6080_v41, %v5676_v0 }
 0x337   : > { %5283 = vmatmul.mubr.msk.f32.vlgmr.msra.gmra.mxu0 %vm755_vm2, %v6035_v27  ;;  %5295 = vmatprep.subr.mxu1 %v5676_v0  ;;  %v2112_v44 = vcombine.low %v2089_v40, %v2104_v38  ;;  %v2111_v50 = vrot.slane %v2097_v43, %v6018_v5  ;;  %v2113_v53 = vcombine.high %v2089_v40, %v2104_v38 }
 0x338   : > { %5291 = vmatpush3.msra.mxu0 %v6053_v34  ;;  %5292 = vmatprep.mubr.msk.f32.mxu0 %vm5677_vm0, %v5676_v0 }
 0x339   : > { %5288 = vmatmul.mubr.msk.f32.vlgmr.msra.gmra.mxu1 %vm755_vm2, %v6063_v37  ;;  %5300 = vmatprep.subr.mxu0 %v5676_v0  ;;  %v2120_v54 = vrot.slane %v2112_v44, %v6020_v9  ;;  %v2127_v58 = vrot.slane %v2113_v53, %v6020_v9  ;;  %v2128_v59 = vcombine.low %v2096_v56, %v2111_v50 }
 0x33a   : > { %5296 = vmatpush3.msra.mxu1 %v6070_v39  ;;  %5297 = vmatprep.mubr.msk.f32.mxu1 %vm5677_vm0, %v5676_v0  ;;  %v2129_v63 = vcombine.high %v2096_v56, %v2111_v50 }
 0x33b   : > { %5293 = vmatmul.mubr.msk.f32.vlgmr.msra.gmra.mxu0 %vm755_vm2, %v6059_v36  ;;  %5305 = vmatprep.subr.mxu1 %v5676_v0  ;;  %v2144_v60 = vcombine.high %v2120_v54, %v5676_v0  ;;  %v2136_v1 = vrot.slane %v2128_v59, %v6020_v9  ;;  %v2145_v2 = vcombine.high %v2127_v58, %v5676_v0 }
 0x33c   : > { %5301 = vmatpush3.msra.mxu0 %v6084_v42  ;;  %5302 = vmatprep.mubr.msk.f32.mxu0 %vm5677_vm0, %v5676_v0  ;;  %v2143_v6 = vrot.slane %v2129_v63, %v6020_v9 }
 0x33d   : > { %5298 = vmatmul.mubr.msk.f32.vlgmr.msra.gmra.mxu1 %vm755_vm2, %v6093_v45  ;;  %5310 = vmatprep.subr.mxu0 %v5676_v0  ;;  %v2146_v7 = vcombine.high %v2136_v1, %v5676_v0 }
 0x33e   : > { %5306 = vmatpush3.msra.mxu1 %v6096_v46  ;;  %5307 = vmatprep.mubr.msk.f32.mxu1 %vm5677_vm0, %v5676_v0  ;;  %v2147_v10 = vcombine.high %v2143_v6, %v5676_v0 }
 0x33f   : > { %5303 = vmatmul.mubr.msk.f32.vlgmr.msra.gmra.mxu0 %vm755_vm2, %v6080_v41  ;;  %5315 = vmatprep.subr.mxu1 %v5676_v0 }
 0x340   : > { %5311 = vmatpush3.msra.mxu0 %v6111_v49  ;;  %5312 = vmatprep.mubr.msk.f32.mxu0 %vm5677_vm0, %v5676_v0 }
 0x341   : > { %5308 = vmatmul.mubr.msk.f32.vlgmr.msra.gmra.mxu1 %vm755_vm2, %v6108_v48  ;;  %5320 = vmatprep.subr.mxu0 %v5676_v0 }
 0x342   : > { %5316 = vmatpush3.msra.mxu1 %v6120_v55  ;;  %5317 = vmatprep.mubr.msk.f32.mxu1 %vm5677_vm0, %v5676_v0 }
 0x343   : > { %5313 = vmatmul.mubr.msk.f32.vlgmr.msra.gmra.mxu0 %vm755_vm2, %v2120_v54  ;;  %5325 = vmatprep.subr.mxu1 %v5676_v0 }
 0x344   : > { %5321 = vmatpush3.msra.mxu0 %v6132_v57  ;;  %5322 = vmatprep.mubr.msk.f32.mxu0 %vm5677_vm0, %v5676_v0 }
 0x345   : > { %5318 = vmatmul.mubr.msk.f32.vlgmr.msra.gmra.mxu1 %vm755_vm2, %v2144_v60  ;;  %5330 = vmatprep.subr.mxu0 %v5676_v0 }
 0x346   : > { %5326 = vmatpush3.msra.mxu1 %v6140_v61  ;;  %5327 = vmatprep.mubr.msk.f32.mxu1 %vm5677_vm0, %v5676_v0 }
 0x347   : > { %5323 = vmatmul.mubr.msk.f32.vlgmr.msra.gmra.mxu0 %vm755_vm2, %v2127_v58  ;;  %5335 = vmatprep.subr.mxu1 %v5676_v0 }
 0x348   : > { %5331 = vmatpush3.msra.mxu0 %v6150_v62  ;;  %5332 = vmatprep.mubr.msk.f32.mxu0 %vm5677_vm0, %v5676_v0 }
 0x349   : > { %5328 = vmatmul.mubr.msk.f32.vlgmr.msra.gmra.mxu1 %vm755_vm2, %v2145_v2  ;;  %5340 = vmatprep.subr.mxu0 %v5676_v0 }
 0x34a   : > { %5336 = vmatpush3.msra.mxu1 %v6158_v3  ;;  %5337 = vmatprep.mubr.msk.f32.mxu1 %vm5677_vm0, %v5676_v0 }
 0x34b   : > { %5333 = vmatmul.mubr.msk.f32.vlgmr.msra.gmra.mxu0 %vm755_vm2, %v2136_v1  ;;  %5345 = vmatprep.subr.mxu1 %v5676_v0 }
 0x34c   : > { %5341 = vmatpush3.msra.mxu0 %v6168_v4  ;;  %5342 = vmatprep.mubr.msk.f32.mxu0 %vm5677_vm0, %v5676_v0 }
 0x34d   : > { %5338 = vmatmul.mubr.msk.f32.vlgmr.msra.gmra.mxu1 %vm755_vm2, %v2146_v7  ;;  %5350 = vmatprep.subr.mxu0 %v5676_v0 }
 0x34e   : > { %5346 = vmatpush3.msra.mxu1 %v6176_v8  ;;  %5347 = vmatprep.mubr.msk.f32.mxu1 %vm5677_vm0, %v5676_v0 }
 0x34f   : > { %5343 = vmatmul.mubr.msk.f32.vlgmr.msra.gmra.mxu0 %vm755_vm2, %v2143_v6  ;;  %5355 = vmatprep.subr.mxu1 %v5676_v0 }
 0x350   : > { %5351 = vmatpush3.msra.mxu0 %v6009_v51  ;;  %5352 = vmatprep.mubr.msk.f32.mxu0 %vm5677_vm0, %v5676_v0 }
 0x351   : > { %5348 = vmatmul.mubr.msk.f32.vlgmr.msra.gmra.mxu1 %vm755_vm2, %v2147_v10  ;;  %5360 = vmatprep.subr.mxu0 %v5676_v0 }
 0x352   : > { %5356 = vmatpush3.msra.mxu1 %v6013_v52  ;;  %5357 = vmatprep.mubr.msk.f32.mxu1 %vm5677_vm0, %v5676_v0 }
 0x353   : > { %5353 = vmatmul.mubr.msk.f32.vlgmr.msra.gmra.mxu0 %vm755_vm2, %v2120_v54  ;;  %5365 = vmatprep.subr.mxu1 %v5676_v0 }
 0x354   : > { %5361 = vmatpush3.msra.mxu0 %v6032_v25  ;;  %5362 = vmatprep.mubr.msk.f32.mxu0 %vm5677_vm0, %v5676_v0 }
 0x355   : > { %5358 = vmatmul.mubr.msk.f32.vlgmr.msra.gmra.mxu1 %vm755_vm2, %v2144_v60  ;;  %5370 = vmatprep.subr.mxu0 %v5676_v0 }
 0x356   : > { %5366 = vmatpush3.msra.mxu1 %v6044_v30  ;;  %5367 = vmatprep.mubr.msk.f32.mxu1 %vm5677_vm0, %v5676_v0 }
 0x357   : > { %5363 = vmatmul.mubr.msk.f32.vlgmr.msra.gmra.mxu0 %vm755_vm2, %v2127_v58  ;;  %5375 = vmatprep.subr.mxu1 %v5676_v0 }
 0x358   : > { %5371 = vmatpush3.msra.mxu0 %v6053_v34  ;;  %5372 = vmatprep.mubr.msk.f32.mxu0 %vm5677_vm0, %v5676_v0 }
 0x359   : > { %5368 = vmatmul.mubr.msk.f32.vlgmr.msra.gmra.mxu1 %vm755_vm2, %v2145_v2  ;;  %5380 = vmatprep.subr.mxu0 %v5676_v0 }
 0x35a   : > { %5376 = vmatpush3.msra.mxu1 %v6070_v39  ;;  %5377 = vmatprep.mubr.msk.f32.mxu1 %vm5677_vm0, %v5676_v0 }
 0x35b   : > { %5373 = vmatmul.mubr.msk.f32.vlgmr.msra.gmra.mxu0 %vm755_vm2, %v2136_v1  ;;  %5385 = vmatprep.subr.mxu1 %v5676_v0 }
 0x35c   : > { %5381 = vmatpush3.msra.mxu0 %v6084_v42  ;;  %5382 = vmatprep.mubr.msk.f32.mxu0 %vm5677_vm0, %v5676_v0 }
 0x35d   : > { %5378 = vmatmul.mubr.msk.f32.vlgmr.msra.gmra.mxu1 %vm755_vm2, %v2146_v7  ;;  %5390 = vmatprep.subr.mxu0 %v5676_v0 }
 0x35e   : > { %5386 = vmatpush3.msra.mxu1 %v6096_v46  ;;  %5387 = vmatprep.mubr.msk.f32.mxu1 %vm5677_vm0, %v5676_v0 }
 0x35f   : > { %5383 = vmatmul.mubr.msk.f32.vlgmr.msra.gmra.mxu0 %vm755_vm2, %v2143_v6  ;;  %5395 = vmatprep.subr.mxu1 %v5676_v0 }
 0x360   : > { %5391 = vmatpush3.msra.mxu0 %v6111_v49  ;;  %5392 = vmatprep.mubr.msk.f32.mxu0 %vm5677_vm0, %v5676_v0 }
 0x361   : > { %5388 = vmatmul.mubr.msk.f32.vlgmr.msra.gmra.mxu1 %vm755_vm2, %v2147_v10  ;;  %5400 = vmatprep.subr.mxu0 %v5676_v0 }
 0x362   : > { %5396 = vmatpush3.msra.mxu1 %v6120_v55  ;;  %5397 = vmatprep.mubr.msk.f32.mxu1 %vm5677_vm0, %v5676_v0 }
 0x363   : > { %5393 = vmatmul.mubr.msk.f32.vlgmr.msra.gmra.mxu0 %vm755_vm2, %v6029_v24  ;;  %5405 = vmatprep.subr.mxu1 %v5676_v0 }
 0x364   : > { %5401 = vmatpush3.msra.mxu0 %v6132_v57  ;;  %5402 = vmatprep.mubr.msk.f32.mxu0 %vm5677_vm0, %v5676_v0 }
 0x365   : > { %5398 = vmatmul.mubr.msk.f32.vlgmr.msra.gmra.mxu1 %vm755_vm2, %v6039_v29  ;;  %5410 = vmatprep.subr.mxu0 %v5676_v0 }
 0x366   : > { %5406 = vmatpush3.msra.mxu1 %v6140_v61  ;;  %5407 = vmatprep.mubr.msk.f32.mxu1 %vm5677_vm0, %v5676_v0 }
 0x367   : > { %5403 = vmatmul.mubr.msk.f32.vlgmr.msra.gmra.mxu0 %vm755_vm2, %v6035_v27  ;;  %5415 = vmatprep.subr.mxu1 %v5676_v0 }
 0x368   : > { %5411 = vmatpush3.msra.mxu0 %v6150_v62  ;;  %5412 = vmatprep.mubr.msk.f32.mxu0 %vm5677_vm0, %v5676_v0 }
 0x369   : > { %5408 = vmatmul.mubr.msk.f32.vlgmr.msra.gmra.mxu1 %vm755_vm2, %v6063_v37  ;;  %5420 = vmatprep.subr.mxu0 %v5676_v0 }
 0x36a   : > { %5416 = vmatpush3.msra.mxu1 %v6158_v3  ;;  %5417 = vmatprep.mubr.msk.f32.mxu1 %vm5677_vm0, %v5676_v0 }
 0x36b   : > { %5413 = vmatmul.mubr.msk.f32.vlgmr.msra.gmra.mxu0 %vm755_vm2, %v6059_v36  ;;  %5425 = vmatprep.subr.mxu1 %v5676_v0 }
 0x36c   : > { %5421 = vmatpush3.msra.mxu0 %v6168_v4  ;;  %5422 = vmatprep.mubr.msk.f32.mxu0 %vm5677_vm0, %v5676_v0 }
 0x36d   : > { %5418 = vmatmul.mubr.msk.f32.vlgmr.msra.gmra.mxu1 %vm755_vm2, %v6093_v45 }
 0x36e   : > { %5426 = vmatpush3.msra.mxu1 %v6176_v8  ;;  %5427 = vmatprep.mubr.msk.f32.mxu1 %vm5677_vm0, %v5676_v0 }
 0x36f   : > { %5423 = vmatmul.mubr.msk.f32.vlgmr.msra.gmra.mxu0 %vm755_vm2, %v6080_v41 }
 0x371   : > { %5428 = vmatmul.mubr.msk.f32.vlgmr.msra.gmra.mxu1 %vm755_vm2, %v6108_v48 }
 0x3f3   : > { %v2233_v51 = vpop.f32.mrf.mxu0 }
 0x3f5   : > { %v5274_v52 = vpop.f32.mrf.mxu0  ;;  %v2306_v11 = vpop.f32.mrf.mxu1 }
 0x3f7   : > { %v5279_v12 = vpop.f32.mrf.mxu1  ;;  %v2379_v13 = vpop.f32.mrf.mxu0 }
 0x3f9   : > { %v5284_v14 = vpop.f32.mrf.mxu0  ;;  %v2452_v15 = vpop.f32.mrf.mxu1 }
 0x3fb   : > { %v5289_v16 = vpop.f32.mrf.mxu1  ;;  %v2525_v17 = vpop.f32.mrf.mxu0 }
 0x3fd   : > { %v5294_v18 = vpop.f32.mrf.mxu0  ;;  %v2598_v19 = vpop.f32.mrf.mxu1 }
 0x3ff   : > { %v5299_v20 = vpop.f32.mrf.mxu1  ;;  %v2671_v21 = vpop.f32.mrf.mxu0 }
 0x401   : > { %v5304_v22 = vpop.f32.mrf.mxu0  ;;  %v2744_v23 = vpop.f32.mrf.mxu1 }
 0x403   : > { %v5309_v24 = vpop.f32.mrf.mxu1  ;;  %v2817_v0 = vpop.f32.mrf.mxu0 }
 0x404   : > { %v3332_v38 = vsub.f32 %v2233_v51, %v2817_v0 }
 0x405   : > { %v5314_v25 = vpop.f32.mrf.mxu0  ;;  %v2890_v26 = vpop.f32.mrf.mxu1 }
 0x406   : > { %v3333_v34 = vsub.f32 %v2306_v11, %v2890_v26 }
 0x407   : > { %v5319_v27 = vpop.f32.mrf.mxu1  ;;  %v2963_v28 = vpop.f32.mrf.mxu0 }
 0x408   : > { %v3334_v35 = vsub.f32 %v2379_v13, %v2963_v28 }
 0x409   : > { %v5324_v29 = vpop.f32.mrf.mxu0  ;;  %v3036_v30 = vpop.f32.mrf.mxu1 }
 0x40a   : > { %v3335_v31 = vsub.f32 %v2452_v15, %v3036_v30  ;;  %v4460_v42 = vcombine.low %v3332_v38, %v3334_v35 }
 0x40b   : > { %v5329_v32 = vpop.f32.mrf.mxu1  ;;  %v3109_v33 = vpop.f32.mrf.mxu0 }
 0x40c   : > { %v4468_v39 = vcombine.low %v3333_v34, %v3335_v31  ;;  %v3336_v43 = vsub.f32 %v2525_v17, %v3109_v33  ;;  %v4467_v55 = vrot.slane %v4460_v42, %v6018_v5 }
 0x40d   : > { %v5334_v36 = vpop.f32.mrf.mxu0  ;;  %v3182_v37 = vpop.f32.mrf.mxu1 }
 0x40e   : > { %v4475_v47 = vrot.slane %v4468_v39, %v6018_v5  ;;  %v3337_v48 = vsub.f32 %v2598_v19, %v3182_v37 }
 0x40f   : > { %v5339_v40 = vpop.f32.mrf.mxu1  ;;  %v3255_v41 = vpop.f32.mrf.mxu0 }
 0x410   : > { %v3338_v44 = vsub.f32 %v2671_v21, %v3255_v41  ;;  %v4492_v59 = vcombine.low %v4467_v55, %v4475_v47 }
 0x411   : > { %v5344_v45 = vpop.f32.mrf.mxu0  ;;  %v3328_v46 = vpop.f32.mrf.mxu1 }
 0x412   : > { %v4476_v49 = vcombine.low %v3336_v43, %v3338_v44  ;;  %v3339_v50 = vsub.f32 %v2744_v23, %v3328_v46  ;;  %v6283_v4 = vrot.slane %v4492_v59, %v6020_v9 }
 0x413   : > { %v5349_v53 = vpop.f32.mrf.mxu1  ;;  %v3406_v54 = vpop.f32.mrf.mxu0 }
 0x414   : > { %v4484_v56 = vcombine.low %v3337_v48, %v3339_v50  ;;  %v4483_v60 = vrot.slane %v4476_v49, %v6018_v5 }
 0x415   : > { %v5354_v57 = vpop.f32.mrf.mxu0  ;;  %v3476_v58 = vpop.f32.mrf.mxu1 }
 0x416   : > { %v4491_v61 = vrot.slane %v4484_v56, %v6018_v5  ;;  %v4570_v56 = vld [vmem:[%s6372_s8] sm:$0xff] }
 0x417   : > { %v5359_v62 = vpop.f32.mrf.mxu1  ;;  %v3546_v63 = vpop.f32.mrf.mxu0  ;;  %v4684_v57 = vld [vmem:[%s6373_s9] sm:$0xff]  ;;  %5430 = vmatprep.subr.mxu0 %v4570_v56 }
 0x418   : > { %v4500_v1 = vcombine.low %v4483_v60, %v4491_v61  ;;  %5435 = vmatprep.subr.mxu1 %v4684_v57  ;;  %5431 = vmatpush3.msra.mxu0 %v4570_v56 }
 0x419   : > { %v5364_v2 = vpop.f32.mrf.mxu0  ;;  %v3616_v3 = vpop.f32.mrf.mxu1  ;;  %5436 = vmatpush3.msra.mxu1 %v4684_v57 }
 0x41a   : > { %v4507_v6 = vrot.slane %v4500_v1, %v6020_v9 }
 0x41b   : > { %v5369_v7 = vpop.f32.mrf.mxu1  ;;  %v3686_v8 = vpop.f32.mrf.mxu0 }
 0x41c   : > { %v4509_v10 = vcombine.high %v6283_v4, %v4507_v6  ;;  %v4508_v51 = vcombine.low %v6283_v4, %v4507_v6 }
 0x41d   : > { %v5374_v52 = vpop.f32.mrf.mxu0  ;;  %v3756_v11 = vpop.f32.mrf.mxu1 }
 0x41e   : > { %4511 = vrot.lane.b32.xlu0 %v4509_v10, %s5680_s24 }
 0x41f   : > { %v5379_v12 = vpop.f32.mrf.mxu1  ;;  %v3826_v13 = vpop.f32.mrf.mxu0 }
 0x421   : > { %v5384_v14 = vpop.f32.mrf.mxu0  ;;  %v3896_v15 = vpop.f32.mrf.mxu1 }
 0x423   : > { %v5389_v16 = vpop.f32.mrf.mxu1  ;;  %v3966_v17 = vpop.f32.mrf.mxu0 }
 0x424   : > { %v3967_v30 = vadd.f32 %v3966_v17, %v3406_v54 }
 0x425   : > { %v5394_v18 = vpop.f32.mrf.mxu0  ;;  %v4036_v19 = vpop.f32.mrf.mxu1 }
 0x426   : > { %v4037_v26 = vadd.f32 %v4036_v19, %v3476_v58 }
 0x427   : > { %v5399_v20 = vpop.f32.mrf.mxu1  ;;  %v4106_v21 = vpop.f32.mrf.mxu0 }
 0x428   : > { %v4107_v27 = vadd.f32 %v4106_v21, %v3546_v63 }
 0x429   : > { %v5404_v22 = vpop.f32.mrf.mxu0  ;;  %v4176_v23 = vpop.f32.mrf.mxu1 }
 0x42a   : > { %v4177_v24 = vadd.f32 %v4176_v23, %v3616_v3  ;;  %v4515_v34 = vcombine.low %v3967_v30, %v4107_v27 }
 0x42b   : > { %v5409_v0 = vpop.f32.mrf.mxu1  ;;  %v4246_v25 = vpop.f32.mrf.mxu0 }
 0x42c   : > { %v4523_v31 = vcombine.low %v4037_v26, %v4177_v24  ;;  %v4247_v35 = vadd.f32 %v4246_v25, %v3686_v8  ;;  %v4522_v44 = vrot.slane %v4515_v34, %v6018_v5 }
 0x42d   : > { %v5414_v28 = vpop.f32.mrf.mxu0  ;;  %v4316_v29 = vpop.f32.mrf.mxu1 }
 0x42e   : > { %v4530_v39 = vrot.slane %v4523_v31, %v6018_v5  ;;  %v4317_v40 = vadd.f32 %v4316_v29, %v3756_v11 }
 0x42f   : > { %v5419_v32 = vpop.f32.mrf.mxu1  ;;  %v4386_v33 = vpop.f32.mrf.mxu0 }
 0x430   : > { %v4387_v36 = vadd.f32 %v4386_v33, %v3826_v13  ;;  %v4547_v46 = vcombine.low %v4522_v44, %v4530_v39 }
 0x431   : > { %v5424_v37 = vpop.f32.mrf.mxu0  ;;  %v4456_v38 = vpop.f32.mrf.mxu1 }
 0x432   : > { %v4531_v41 = vcombine.low %v4247_v35, %v4387_v36  ;;  %v4457_v42 = vadd.f32 %v4456_v38, %v3896_v15  ;;  %v4554_v50 = vrot.slane %v4547_v46, %v6020_v9 }
 0x433   : > { %v5429_v43 = vpop.f32.mrf.mxu1 }
 0x434   : > { %v4539_v45 = vcombine.low %v4317_v40, %v4457_v42  ;;  %v4538_v47 = vrot.slane %v4531_v41, %v6018_v5 }
 0x436   : > { %v4546_v48 = vrot.slane %v4539_v45, %v6018_v5 }
 0x438   : > { %v4555_v49 = vcombine.low %v4538_v47, %v4546_v48 }
 0x43a   : > { %v4562_v53 = vrot.slane %v4555_v49, %v6020_v9 }
 0x43c   : > { %v4564_v54 = vcombine.high %v4554_v50, %v4562_v53  ;;  %v4563_v55 = vcombine.low %v4554_v50, %v4562_v53 }
 0x43e   : > { %4566 = vrot.lane.b32.xlu1 %v4564_v54, %s5680_s24 }
 0x490   : > { %v4512_v5 = vpop.permute.xlu0 %4511 }
 0x491   : > { %v4514_v9 = vsel %vm755_vm2, %v4508_v51, %v4512_v5 }
 0x492   : > { %4571 = vxpose.xlu1.b32.start.end [1/1] (short) (narrow) %v4514_v9, 16 }
 0x4b0   : > { %v4567_v58 = vpop.permute.xlu1 %4566 }
 0x4b1   : > { %v4569_v59 = vsel %vm755_vm2, %v4563_v55, %v4567_v58 }
 0x4b2   : > { %4685 = vxpose.xlu0.b32.start.end [1/1] (short) (narrow) %v4569_v59, 16 }
 0x50e   : > { %v4587_v60 = vpop.trf.xlu1 }
 0x50f   : > { %5432 = vmatprep.mubr.msk.f32.mxu0 %vm755_vm2, %v4587_v60 }
 0x512   : > { %v4588_v61 = vpop.trf.xlu1 }
 0x513   : > { %5433 = vmatmul.mubr.msk.f32.vlgmr.msra.gmra.mxu0 %vm755_vm2, %v4588_v61 }
 0x52e   : > { %v4701_v62 = vpop.trf.xlu0 }
 0x52f   : > { %5437 = vmatprep.mubr.msk.f32.mxu1 %vm755_vm2, %v4701_v62 }
 0x532   : > { %v4702_v63 = vpop.trf.xlu0 }
 0x533   : > { %5438 = vmatmul.mubr.msk.f32.vlgmr.msra.gmra.mxu1 %vm755_vm2, %v4702_v63 }
 0x5d3   : > { %v5434_v1 = vpop.f32.mrf.mxu0 }
 0x5d5   : > { %v4675_v4 = vpop.f32.mrf.mxu0 }
 0x5f3   : > { %v5439_v2 = vpop.f32.mrf.mxu1 }
 0x5f4   : > { %v4799_v3 = vsub.f32 %v5434_v1, %v5439_v2 }
 0x5f5   : > { %v4789_v6 = vpop.f32.mrf.mxu1 }
 0x5f6   : > { %4801 = vst [vmem:[%s483_s15 + $0x8] sm:$0xff] %v4799_v3  ;;  %v4798_v7 = vsub.f32 %v4675_v4, %v4789_v6 }
 0x5f8   : > { %4800 = vst [vmem:[%s483_s15] sm:$0xff] %v4798_v7 }
 0x5f9   : > { %5599 = shalt.err (!%p5596_p10)
}
 0x5fa   : > { %s5600_s26 = scalar_lea.hbm %s6315_s29, 256  ;;  %s5604_s22 = scalar_lea.hbm %s6400_s6, 512 }
 0x5fb   : > { %p5601_p1 = scmp.ne.s32.totalorder %s6315_s29, %s5600_s26  ;;  %p5605_p0 = scmp.lt.s32.totalorder %s6315_s29, %s6400_s6 }
 0x5fc   : > { %p5606_p8 = scmp.lt.s32.totalorder %s5604_s22, %s5600_s26 }
 0x5fd   : > { %p5602_p13 = pnand %p5601_p1, %p5790_p9 }
 0x5fe   : > { %p5607_p2 = por %p5606_p8, %p5605_p0 }
 0x5ff   : > { %p5603_p3 = pneg %p5602_p13 }
 0x601   : > { %p5608_p5 = pnand %p5607_p2, %p5603_p3 }
 0x603   : > { %5611 = shalt.err (!%p5608_p5)
}
 0x604   : > { %s5682_s27 = smov 128   ;;  %s5683_s20 = smov 256  }
 0x605   : > { %5444 = dma.vmem_to_hbm [thread:$0]  (%p5790_p9), %s6310_s19, 256, %s6315_s29, %s4803_s11, %s5682_s27, %s5683_s20, %s5680_s24  }
 0x606 PF: > { %s6401_s10 = sld [smem:[#allocation11_spill]]  ;;  %p5454_p6 = pnand %p4963_p12, %p5797_p11 }
 0x608   : > { %p5455_p4 = pneg %p5454_p6 }
 0x60c   : > { %s4833_s21 = sand.u32 1, %s6401_s10  }
 0x60d   : > { %s4834_s13 = scalar_lea.sflag [#allocation4], %s4833_s21 }
 0x60e   : > { %5645 = dma.done.wait (%p5455_p4), %s4834_s13, 256  }
 0x60f   : > { %5647 = vsyncadd (%p5455_p4), %s4834_s13, 4294967040  ;;  %s29_s18 = sadd.s32 1, %s5670_s18   ;;  %s6403_s12 = sld [smem:[#allocation12_spill]] }
 0x610   : > { %p26_p7 = scmp.ge.s32.totalorder %s29_s18, 4   ;;  %s6404_s15 = sld [smem:[#allocation15_spill]] }
 0x611   : > { %s6405_s28 = sld [smem:[#allocation13_spill]]  ;;  %s6406_s13 = smov %s5654_s14 }
 0x612   : > { %s6408_s16 = smov %s5666_s17 }
 0x613   :  { %28 = sbr.rel (!%p26_p7) target bundleno = 11 (0xb), region = 124 }
 0x615   : > { %s6407_s14 = smov %s6403_s12 }
 0x617   : > { %s6409_s17 = smov %s6405_s28 }
 0x618   :  { %4839 = vsyncpa [#allocation3], 1 }
 0x619   :  { %4841 = vsyncpa [#allocation3 + $0x1], 1 }
 0x61a   :  { %4842 = vsyncpa [#allocation6], 1 }
 0x61b   :  { %4844 = vsyncpa [#allocation6 + $0x1], 1 }
 0x61c   :  { %4845 = vsyncpa [#allocation4], 1 }
 0x61d   :  { %4847 = vsyncpa [#allocation4 + $0x1], 1 }

</bundles_post_ra>
